<compile_context>
chip_gen: v5e
topology: v5e:2x2
jax: 0.10.0
libtpu: 0.0.40
codegen_flags: <defaults>
</compile_context>

<pallas_src>
import functools

import jax
import jax.numpy as jnp
from jax.experimental import pallas as pl
from jax.experimental.pallas import tpu as pltpu


# --------------------------------- kernel -----------------------------------

def _conv_trans2d_im2col_kernel(K, Wp, TOH, x_ref, w_ref, b_ref, o_ref, col_ref):
    """One (batch n, output-row-tile t) grid step of ConvTranspose2d (stride=1, pad=0).

    x_ref   : (1, 1, (TOH+K)*Wp, Cin)  row-flattened padded input slab (with halo)
    w_ref   : (K*K*Cin, Cout)          flipped, tap-major im2col weight matrix
    b_ref   : (1, Cout)                bias row
    o_ref   : (1, TOH*Wp, Cout)        output tile (written exactly once)
    col_ref : (TOH*Wp, K*K*Cin)        VMEM scratch: im2col patch matrix
    """
    M = TOH * Wp
    Cin = x_ref.shape[-1]

    # Build the im2col patch matrix: tap (kh, kw) of every output position is a
    # single CONTIGUOUS static window of the row-flattened slab starting at
    # kh*Wp + kw.  Row wrap-around only pollutes the K-1 padded columns, which
    # the wrapper discards.
    for kh in range(K):
        for kw in range(K):
            t = kh * K + kw
            off = kh * Wp + kw
            col_ref[:, t * Cin:(t + 1) * Cin] = x_ref[0, 0, off:off + M, :]

    # One MXU matmul per grid step, contraction dim = K*K*Cin (vs. Cin before),
    # f32 accumulation.  Bias is fused into the single aligned full-block store.
    y = jnp.dot(col_ref[...], w_ref[...], preferred_element_type=jnp.float32)
    o_ref[0] = y + b_ref[...]


# ------------------------------ tile selection -------------------------------

def _choose_row_tile(Ho, Wp, Cin, Cout, K, budget_bytes=16 << 20):
    """Output-row tile height: multiple of 8, grown until the matmul M dim
    (TOH*Wp) is comfortable or the per-step VMEM budget is reached."""
    Hr = ((Ho + 7) // 8) * 8

    def step_bytes(toh):
        m = toh * Wp
        return 4 * (2 * (toh + K) * Wp * Cin        # double-buffered input slab
                    + 2 * m * Cout                  # double-buffered output tile
                    + m * K * K * Cin               # im2col scratch
                    + 2 * (K * K * Cin + 1) * Cout)  # weights + bias buffers

    toh = 8
    while (2 * toh < Hr
           and 2 * toh * Wp <= 2048
           and step_bytes(2 * toh) <= budget_bytes):
        toh *= 2
    return toh


# --------------------------------- wrapper ----------------------------------

def make_random_fixed_conv_trans2d(weight, bias):
    """Builds the forward pass for a frozen ConvTranspose2d (module defaults).

    weight : (Cin, Cout, K, K)  torch ConvTranspose2d weight layout
    bias   : (Cout,)
    Returns a jitted function x:(N, Cin, H, W) -> (N, Cout, H+K-1, W+K-1).
    """
    # TODO(synk): non-default stride / padding / output_padding / dilation /
    # groups / padding_mode of ConvTranspose2d are not implemented (the module
    # under test is constructed with the defaults).
    Cin, Cout, K, _ = weight.shape

    # One-time prep of the frozen parameters (hoisted out of the forward):
    # direct-conv weights are the spatially flipped transposed-conv weights,
    # laid out tap-major to match the im2col column order:
    #   w2[(kh*K + kw)*Cin + ci, co] = weight[ci, co, K-1-kh, K-1-kw]
    w2 = jnp.transpose(jnp.flip(weight, axis=(2, 3)), (2, 3, 0, 1))
    w2 = w2.reshape(K * K * Cin, Cout).astype(jnp.float32)
    b_row = bias.reshape(1, Cout).astype(jnp.float32)

    @jax.jit
    def forward(x_nchw):
        N, Cin_x, H, W = x_nchw.shape
        assert Cin_x == Cin, (Cin_x, Cin)
        Ho, Wo = H + K - 1, W + K - 1
        Wp = W + 2 * (K - 1)                       # padded width (K-1 each side)

        TOH = _choose_row_tile(Ho, Wp, Cin, Cout, K)
        n_t = -(-Ho // TOH)                        # cdiv
        Ht = n_t * TOH                             # padded output rows
        SR = TOH + K                               # slab rows: tile + halo + wrap row
        M = TOH * Wp                               # matmul M dim per grid step

        # NCHW -> NHWC, zero-pad to the direct-conv ("full" correlation)
        # geometry; one pass over the (small) input side.
        x_nhwc = jnp.transpose(x_nchw, (0, 2, 3, 1)).astype(jnp.float32)
        xp = jnp.pad(x_nhwc, ((0, 0),
                              (K - 1, Ht + 1 - H),  # total rows = Ht + K
                              (K - 1, K - 1),
                              (0, 0)))
        xp_flat = xp.reshape(N, (Ht + K) * Wp, Cin)

        # Overlapping row slabs (K-row halo) so every grid step is independent:
        # no accumulator across tiles, both grid axes embarrassingly parallel.
        slabs = jnp.stack(
            [xp_flat[:, t * TOH * Wp: t * TOH * Wp + SR * Wp, :]
             for t in range(n_t)], axis=1)          # (N, n_t, SR*Wp, Cin)

        out_flat = pl.pallas_call(
            functools.partial(_conv_trans2d_im2col_kernel, K, Wp, TOH),
            out_shape=jax.ShapeDtypeStruct((N, n_t * M, Cout), jnp.float32),
            grid=(N, n_t),
            in_specs=[
                pl.BlockSpec((1, 1, SR * Wp, Cin), lambda n, t: (n, t, 0, 0)),
                pl.BlockSpec((K * K * Cin, Cout), lambda n, t: (0, 0)),
                pl.BlockSpec((1, Cout), lambda n, t: (0, 0)),
            ],
            out_specs=pl.BlockSpec((1, M, Cout), lambda n, t: (n, t, 0)),
            scratch_shapes=[pltpu.VMEM((M, K * K * Cin), jnp.float32)],
            compiler_params=pltpu.CompilerParams(
                # No cross-step dependences -> both axes parallel (v7x 2 TCs).
                dimension_semantics=("parallel", "parallel"),
                # Above the 32 MiB scoped default (v5e/v6e), below v7x budget.
                vmem_limit_bytes=48 * 1024 * 1024,
            ),
        )(slabs, w2, b_row)

        # Drop the padded garbage rows/columns and restore the torch NCHW
        # contract (the transpose is the one extra output pass we keep for
        # layout compatibility; skip it if the consumer accepts NHWC).
        out = out_flat.reshape(N, Ht, Wp, Cout)[:, :Ho, :Wo, :]
        return jnp.transpose(out, (0, 3, 1, 2))

    return forward


# -------------------------------- reference ---------------------------------

def _reference(x, weight, bias):
    """Pure-JAX reference straight from the ConvTranspose2d definition."""
    N, Cin, H, W = x.shape
    Cout, K = weight.shape[1], weight.shape[2]
    out = jnp.zeros((N, Cout, H + K - 1, W + K - 1), jnp.float32)
    for kh in range(K):
        for kw in range(K):
            contrib = jnp.einsum('nihw,io->nohw', x, weight[:, :, kh, kw],
                                 precision=jax.lax.Precision.HIGHEST)
            out = out.at[:, :, kh:kh + H, kw:kw + W].add(contrib)
    return out + bias[None, :, None, None]


# ----------------------------------- main ------------------------------------

if __name__ == "__main__":
    # Small deterministic config consistent with the module.
    N, Cin, H, W = 2, 4, 16, 16
    Cout, K = 8, 3

    key = jax.random.PRNGKey(0)
    k_x, k_w, k_b = jax.random.split(key, 3)

    x = jax.random.normal(k_x, (N, Cin, H, W), jnp.float32)
    # Fixed random ConvTranspose2d params (requires_grad_(False) in torch);
    # torch ConvTranspose2d weight layout is (in_channels, out_channels, K, K).
    weight = jax.random.normal(k_w, (Cin, Cout, K, K), jnp.float32) * 0.3
    bias = jax.random.normal(k_b, (Cout,), jnp.float32) * 0.1

    # One-time setup of the frozen module (prep hoisted out of the forward).
    conv_t = make_random_fixed_conv_trans2d(weight, bias)

    out = jax.block_until_ready(conv_t(x))

    ref = _reference(x, weight, bias)
    assert out.shape == (N, Cout, H + K - 1, W + K - 1), out.shape
    max_err = float(jnp.max(jnp.abs(out - ref)))
    assert jnp.allclose(out, ref, atol=1e-4, rtol=1e-4), max_err

    print("KERNEL_OK")
</pallas_src>

<mosaic_0001>
module attributes {stable_mosaic.version = 11 : i64} {
  func.func @_conv_trans2d_im2col_kernel(%arg0: i32, %arg1: i32, %arg2: memref<1x1x380x4xf32, #tpu.memory_space<vmem>>, %arg3: memref<36x8xf32, #tpu.memory_space<vmem>>, %arg4: memref<1x8xf32, #tpu.memory_space<vmem>>, %arg5: memref<1x320x8xf32, #tpu.memory_space<vmem>>, %arg6: memref<320x36xf32, #tpu.memory_space<vmem>>) attributes {dimension_semantics = [#tpu.dimension_semantics<parallel>, #tpu.dimension_semantics<parallel>], iteration_bounds = array<i64: 2, 2>, scalar_prefetch = 0 : i64, scratch_operands = 1 : i64, tpu.core_type = #tpu.core_type<tc>, window_params = [{transform_indices = @transform_0, window_bounds = array<i64: 1, 1, 380, 4>}, {pipeline_mode = #tpu.pipeline_mode<synchronous>, transform_indices = @transform_1, window_bounds = array<i64: 36, 8>}, {pipeline_mode = #tpu.pipeline_mode<synchronous>, transform_indices = @transform_2, window_bounds = array<i64: 1, 8>}, {transform_indices = @transform_3, window_bounds = array<i64: 1, 320, 8>}]} {
    %c0 = arith.constant 0 : index
    %c0_0 = arith.constant 0 : index
    %c0_1 = arith.constant 0 : index
    %c0_2 = arith.constant 0 : index
    %0 = vector.load %arg2[%c0, %c0_0, %c0_1, %c0_2] : memref<1x1x380x4xf32, #tpu.memory_space<vmem>>, vector<1x1x320x4xf32>
    %1 = vector.shape_cast %0 : vector<1x1x320x4xf32> to vector<320x4xf32>
    %c0_3 = arith.constant 0 : index
    %c0_4 = arith.constant 0 : index
    %2 = vector.load %arg6[%c0_3, %c0_4] : memref<320x36xf32, #tpu.memory_space<vmem>>, vector<320x4xf32>
    tpu.vector_store %arg6[%c0_3, %c0_4], %1 {strides = array<i32>} : memref<320x36xf32, #tpu.memory_space<vmem>>, vector<320x4xf32>,
    %c0_5 = arith.constant 0 : index
    %c0_6 = arith.constant 0 : index
    %c1 = arith.constant 1 : index
    %c0_7 = arith.constant 0 : index
    %3 = vector.load %arg2[%c0_5, %c0_6, %c1, %c0_7] : memref<1x1x380x4xf32, #tpu.memory_space<vmem>>, vector<1x1x320x4xf32>
    %4 = vector.shape_cast %3 : vector<1x1x320x4xf32> to vector<320x4xf32>
    %c0_8 = arith.constant 0 : index
    %c4 = arith.constant 4 : index
    %5 = vector.load %arg6[%c0_8, %c4] : memref<320x36xf32, #tpu.memory_space<vmem>>, vector<320x4xf32>
    tpu.vector_store %arg6[%c0_8, %c4], %4 {strides = array<i32>} : memref<320x36xf32, #tpu.memory_space<vmem>>, vector<320x4xf32>,
    %c0_9 = arith.constant 0 : index
    %c0_10 = arith.constant 0 : index
    %c2 = arith.constant 2 : index
    %c0_11 = arith.constant 0 : index
    %6 = vector.load %arg2[%c0_9, %c0_10, %c2, %c0_11] : memref<1x1x380x4xf32, #tpu.memory_space<vmem>>, vector<1x1x320x4xf32>
    %7 = vector.shape_cast %6 : vector<1x1x320x4xf32> to vector<320x4xf32>
    %c0_12 = arith.constant 0 : index
    %c8 = arith.constant 8 : index
    %8 = vector.load %arg6[%c0_12, %c8] : memref<320x36xf32, #tpu.memory_space<vmem>>, vector<320x4xf32>
    tpu.vector_store %arg6[%c0_12, %c8], %7 {strides = array<i32>} : memref<320x36xf32, #tpu.memory_space<vmem>>, vector<320x4xf32>,
    %c0_13 = arith.constant 0 : index
    %c0_14 = arith.constant 0 : index
    %c20 = arith.constant 20 : index
    %c0_15 = arith.constant 0 : index
    %9 = vector.load %arg2[%c0_13, %c0_14, %c20, %c0_15] : memref<1x1x380x4xf32, #tpu.memory_space<vmem>>, vector<1x1x320x4xf32>
    %10 = vector.shape_cast %9 : vector<1x1x320x4xf32> to vector<320x4xf32>
    %c0_16 = arith.constant 0 : index
    %c12 = arith.constant 12 : index
    %11 = vector.load %arg6[%c0_16, %c12] : memref<320x36xf32, #tpu.memory_space<vmem>>, vector<320x4xf32>
    tpu.vector_store %arg6[%c0_16, %c12], %10 {strides = array<i32>} : memref<320x36xf32, #tpu.memory_space<vmem>>, vector<320x4xf32>,
    %c0_17 = arith.constant 0 : index
    %c0_18 = arith.constant 0 : index
    %c21 = arith.constant 21 : index
    %c0_19 = arith.constant 0 : index
    %12 = vector.load %arg2[%c0_17, %c0_18, %c21, %c0_19] : memref<1x1x380x4xf32, #tpu.memory_space<vmem>>, vector<1x1x320x4xf32>
    %13 = vector.shape_cast %12 : vector<1x1x320x4xf32> to vector<320x4xf32>
    %c0_20 = arith.constant 0 : index
    %c16 = arith.constant 16 : index
    %14 = vector.load %arg6[%c0_20, %c16] : memref<320x36xf32, #tpu.memory_space<vmem>>, vector<320x4xf32>
    tpu.vector_store %arg6[%c0_20, %c16], %13 {strides = array<i32>} : memref<320x36xf32, #tpu.memory_space<vmem>>, vector<320x4xf32>,
    %c0_21 = arith.constant 0 : index
    %c0_22 = arith.constant 0 : index
    %c22 = arith.constant 22 : index
    %c0_23 = arith.constant 0 : index
    %15 = vector.load %arg2[%c0_21, %c0_22, %c22, %c0_23] : memref<1x1x380x4xf32, #tpu.memory_space<vmem>>, vector<1x1x320x4xf32>
    %16 = vector.shape_cast %15 : vector<1x1x320x4xf32> to vector<320x4xf32>
    %c0_24 = arith.constant 0 : index
    %c20_25 = arith.constant 20 : index
    %17 = vector.load %arg6[%c0_24, %c20_25] : memref<320x36xf32, #tpu.memory_space<vmem>>, vector<320x4xf32>
    tpu.vector_store %arg6[%c0_24, %c20_25], %16 {strides = array<i32>} : memref<320x36xf32, #tpu.memory_space<vmem>>, vector<320x4xf32>,
    %c0_26 = arith.constant 0 : index
    %c0_27 = arith.constant 0 : index
    %c40 = arith.constant 40 : index
    %c0_28 = arith.constant 0 : index
    %18 = vector.load %arg2[%c0_26, %c0_27, %c40, %c0_28] : memref<1x1x380x4xf32, #tpu.memory_space<vmem>>, vector<1x1x320x4xf32>
    %19 = vector.shape_cast %18 : vector<1x1x320x4xf32> to vector<320x4xf32>
    %c0_29 = arith.constant 0 : index
    %c24 = arith.constant 24 : index
    %20 = vector.load %arg6[%c0_29, %c24] : memref<320x36xf32, #tpu.memory_space<vmem>>, vector<320x4xf32>
    tpu.vector_store %arg6[%c0_29, %c24], %19 {strides = array<i32>} : memref<320x36xf32, #tpu.memory_space<vmem>>, vector<320x4xf32>,
    %c0_30 = arith.constant 0 : index
    %c0_31 = arith.constant 0 : index
    %c41 = arith.constant 41 : index
    %c0_32 = arith.constant 0 : index
    %21 = vector.load %arg2[%c0_30, %c0_31, %c41, %c0_32] : memref<1x1x380x4xf32, #tpu.memory_space<vmem>>, vector<1x1x320x4xf32>
    %22 = vector.shape_cast %21 : vector<1x1x320x4xf32> to vector<320x4xf32>
    %c0_33 = arith.constant 0 : index
    %c28 = arith.constant 28 : index
    %23 = vector.load %arg6[%c0_33, %c28] : memref<320x36xf32, #tpu.memory_space<vmem>>, vector<320x4xf32>
    tpu.vector_store %arg6[%c0_33, %c28], %22 {strides = array<i32>} : memref<320x36xf32, #tpu.memory_space<vmem>>, vector<320x4xf32>,
    %c0_34 = arith.constant 0 : index
    %c0_35 = arith.constant 0 : index
    %c42 = arith.constant 42 : index
    %c0_36 = arith.constant 0 : index
    %24 = vector.load %arg2[%c0_34, %c0_35, %c42, %c0_36] : memref<1x1x380x4xf32, #tpu.memory_space<vmem>>, vector<1x1x320x4xf32>
    %25 = vector.shape_cast %24 : vector<1x1x320x4xf32> to vector<320x4xf32>
    %c0_37 = arith.constant 0 : index
    %c32 = arith.constant 32 : index
    %26 = vector.load %arg6[%c0_37, %c32] : memref<320x36xf32, #tpu.memory_space<vmem>>, vector<320x4xf32>
    tpu.vector_store %arg6[%c0_37, %c32], %25 {strides = array<i32>} : memref<320x36xf32, #tpu.memory_space<vmem>>, vector<320x4xf32>,
    %c0_38 = arith.constant 0 : index
    %c0_39 = arith.constant 0 : index
    %27 = vector.load %arg6[%c0_38, %c0_39] : memref<320x36xf32, #tpu.memory_space<vmem>>, vector<320x36xf32>
    %c0_40 = arith.constant 0 : index
    %c0_41 = arith.constant 0 : index
    %28 = vector.load %arg3[%c0_40, %c0_41] : memref<36x8xf32, #tpu.memory_space<vmem>>, vector<36x8xf32>
    %cst = arith.constant dense<0.000000e+00> : vector<320x8xf32>
    %29 = tpu.matmul %27, %28, %cst {dimension_numbers = #tpu.dot_dimension_numbers<[1], [0], [0], [1], [0, 0, 1, 1], [], []>} : vector<320x36xf32>, vector<36x8xf32>, vector<320x8xf32> -> vector<320x8xf32>
    %c0_42 = arith.constant 0 : index
    %c0_43 = arith.constant 0 : index
    %30 = vector.load %arg4[%c0_42, %c0_43] : memref<1x8xf32, #tpu.memory_space<vmem>>, vector<1x8xf32>
    %31 = vector.broadcast %30 : vector<1x8xf32> to vector<320x8xf32>
    %32 = arith.addf %29, %31 : vector<320x8xf32>
    %c0_44 = arith.constant 0 : index
    %c0_45 = arith.constant 0 : index
    %c0_46 = arith.constant 0 : index
    %33 = vector.load %arg5[%c0_44, %c0_45, %c0_46] : memref<1x320x8xf32, #tpu.memory_space<vmem>>, vector<1x320x8xf32>
    %34 = vector.shape_cast %33 : vector<1x320x8xf32> to vector<320x8xf32>
    %35 = vector.shape_cast %32 : vector<320x8xf32> to vector<1x320x8xf32>
    tpu.vector_store %arg5[%c0_44, %c0_45, %c0_46], %35 {strides = array<i32>} : memref<1x320x8xf32, #tpu.memory_space<vmem>>, vector<1x320x8xf32>,
    return
  }
  func.func @transform_0(%arg0: i32, %arg1: i32) -> (i32, i32, i32, i32) {
    %c0_i32 = arith.constant 0 : i32
    %c0_i32_0 = arith.constant 0 : i32
    %c0_i32_1 = arith.constant 0 : i32
    return %arg0, %arg1, %c0_i32, %c0_i32_0 : i32, i32, i32, i32
  }
  func.func @transform_1(%arg0: i32, %arg1: i32) -> (i32, i32) {
    %c0_i32 = arith.constant 0 : i32
    %c0_i32_0 = arith.constant 0 : i32
    %c0_i32_1 = arith.constant 0 : i32
    return %c0_i32, %c0_i32_0 : i32, i32
  }
  func.func @transform_2(%arg0: i32, %arg1: i32) -> (i32, i32) {
    %c0_i32 = arith.constant 0 : i32
    %c0_i32_0 = arith.constant 0 : i32
    %c0_i32_1 = arith.constant 0 : i32
    return %c0_i32, %c0_i32_0 : i32, i32
  }
  func.func @transform_3(%arg0: i32, %arg1: i32) -> (i32, i32, i32) {
    %c0_i32 = arith.constant 0 : i32
    %c0_i32_0 = arith.constant 0 : i32
    return %arg0, %arg1, %c0_i32 : i32, i32, i32
  }
}

</mosaic_0001>

<bundles_post_ra>
// kernel: forward.1
= control target key start
LH: loop header
LB: loop body
LE: loop exit
PB: predicated region body
PF: predicated region fallthrough
CT: control target
= control target key end

     0   :  { %s2847_s12 = smov 0   ;;  %s2849_s13 = smov 0   ;;  %s4131_s0 = inlined_call_operand.vmem [shape: f32[2,2,380,4], index: 0, kind: input, shape index: {}]   ;;  %s4132_s1 = inlined_call_operand.vmem [shape: f32[36,8], index: 1, kind: input, shape index: {}]   ;;  %s4133_s2 = inlined_call_operand.vmem [shape: f32[1,8], index: 2, kind: input, shape index: {}]   ;;  %s4134_s3 = inlined_call_operand.vmem [shape: f32[2,640,8], index: 3, kind: output, shape index: {}]  }
   0x1   :  { %s2851_s14 = smov 0   ;;  %s2853_s15 = smov 0  }
   0x2   :  { %s2855_s16 = smov 0  }
   0x3 LB: > { %s22_s17 = sadd.s32 1, %s2809_s14  ;;  %s25_s18 = sadd.s32 1, %s2813_s15  ;;  %s2817_s16 = sphi %s2855_s16, %s13_s16   ;;  %s2813_s15 = sphi %s2853_s15, %s4138_s15   ;;  %s2809_s14 = sphi %s2851_s14, %s4137_s14   ;;  %s2805_s13 = sphi %s2849_s13, %s4136_s13   ;;  %s2801_s12 = sphi %s2847_s12, %s4135_s12  }
   0x4   : > { %p23_p0 = scmp.ge.s32.totalorder %s22_s17, 2  ;;  %p2666_p1 = scmp.ge.s32.totalorder %s2817_s16, 1 }
   0x5   : > { %p157_p2 = scmp.lt.s32.totalorder %s2817_s16, 5 }
   0x6   : > { %s4140_s17 = smov (%p23_p0, %s22_s17), 0  ;;  %s4142_s18 = smov (!%p23_p0, %s25_s18), %s2813_s15 }
   0x7   : > { %p158_p3 = pnand %p2666_p1, %p157_p2  ;;  %p27_p4 = scmp.ge.s32.totalorder %s4142_s18, 2 }
   0x8   : > { %p189_p5 = scmp.lt.s32.totalorder (!%p158_p3), %s2805_s13, 1  ;;  %p191_p6 = scmp.lt.s32.totalorder (!%p158_p3), %s2801_s12, 1 }
   0x9   : > { %s4144_s18 = smov (%p27_p4, %s4142_s18), 0  ;;  %161 = sbr.rel (%p158_p3) target bundleno = 1125 (0x465), region = 32 }
   0xa   : > { %s2819_s27 = smov (!%p158_p3), 4   ;;  %s2820_s28 = smov (!%p158_p3), 8  }
   0xb   : > { %s2821_s29 = smov (!%p158_p3), 12   ;;  %s2822_s30 = smov (!%p158_p3), 16  }
   0xc   : > { %s2823_s4 = smov (!%p158_p3), 20   ;;  %s2824_s5 = smov (!%p158_p3), 24  }
   0xd   : > { %s2825_s6 = smov (!%p158_p3), 28   ;;  %s2826_s7 = smov (!%p158_p3), 32  }
   0xe   : > { %s4146_s13 = smov (!%p189_p5, %s2805_s13), 1  ;;  %vm248_vm0 = vcmask 31744   ;;  %vm489_vm1 = vcmask 64544   ;;  %vm730_vm2 = vcmask 97344   ;;  %vm971_vm3 = vcmask 130144   ;;  %s198_s25 = smul.u32 40, %s2801_s12 }
   0xf   : > { %s192_s19 = scalar_select %p191_p6, %s2801_s12, 1  ;;  %vm1212_vm4 = vcmask 162944   ;;  %vm1453_vm5 = vcmask 195744   ;;  %vm1694_vm6 = vcmask 228544   ;;  %vm2387_vm7 = vcmask 1043456  }
  0x10   : > { %s2728_s20 = smul.u32 96, %s4146_s13  ;;  %vm1935_vm8 = vcmask 261344   ;;  %vm2176_vm9 = vcmask 294144   ;;  %vm2266_vm10 = vcmask 293888   ;;  %p201_p7 = scmp.lt.s32.totalorder %s198_s25, 79  ;;  %vm2528_vm11 = vcmask 64512  }
  0x11   : > { %s2727_s21 = smul.u32 48, %s192_s19 }
  0x12   : > { %s4148_s25 = smov (!%p201_p7, %s198_s25), 79 }
  0x13   : > { %s195_s22 = sadd.s32 %s2728_s20, %s2727_s21 }
  0x14   : > { %s2667_s23 = sshll.u32 %s195_s22, 3 }
  0x15   : > { %s2887_s26 = scalar_lea.vmem %s4131_s0, %s2667_s23 }
  0x16   : > { %v291_v0 = vld [vmem:[%s2887_s26 + $0x11] sm:$0xff]  ;;  %v289_v1 = vld [vmem:[%s2887_s26 + $0x1] sm:$0xff]  ;;  %v292_v3 = vld [vmem:[%s2887_s26 + $0x19] sm:$0xff] }
  0x17   : > { %373 = vrot.lane.b32.xlu1 %v291_v0, %s2819_s27  ;;  %369 = vrot.lane.b32.xlu0 %v289_v1, %s2819_s27  ;;  %v293_v2 = vld [vmem:[%s2887_s26 + $0x21] sm:$0xff]  ;;  %v290_v4 = vld [vmem:[%s2887_s26 + $0x9] sm:$0xff] }
  0x18   : > { %377 = vrot.lane.b32.xlu2 %v293_v2, %s2819_s27  ;;  %v294_v5 = vld [vmem:[%s2887_s26 + $0x29] sm:$0xff]  ;;  %v296_v6 = vld [vmem:[%s2887_s26 + $0x39] sm:$0xff]  ;;  %v295_v7 = vld [vmem:[%s2887_s26 + $0x31] sm:$0xff] }
  0x19   : > { %v297_v8 = vld [vmem:[%s2887_s26 + $0x41] sm:$0xff]  ;;  %v299_v9 = vld [vmem:[%s2887_s26 + $0x51] sm:$0xff]  ;;  %v298_v10 = vld [vmem:[%s2887_s26 + $0x49] sm:$0xff] }
  0x1a   : > { %v300_v11 = vld [vmem:[%s2887_s26 + $0x59] sm:$0xff]  ;;  %v302_v12 = vld [vmem:[%s2887_s26 + $0x69] sm:$0xff]  ;;  %v301_v13 = vld [vmem:[%s2887_s26 + $0x61] sm:$0xff] }
  0x1b   : > { %v303_v14 = vld [vmem:[%s2887_s26 + $0x71] sm:$0xff]  ;;  %v305_v15 = vld [vmem:[%s2887_s26 + $0x81] sm:$0xff]  ;;  %v304_v16 = vld [vmem:[%s2887_s26 + $0x79] sm:$0xff] }
  0x1c   : > { %v306_v17 = vld [vmem:[%s2887_s26 + $0x89] sm:$0xff]  ;;  %v308_v18 = vld [vmem:[%s2887_s26 + $0x99] sm:$0xff]  ;;  %v307_v19 = vld [vmem:[%s2887_s26 + $0x91] sm:$0xff] }
  0x1d   : > { %v309_v20 = vld [vmem:[%s2887_s26 + $0xa1] sm:$0xff]  ;;  %v311_v21 = vld [vmem:[%s2887_s26 + $0xb1] sm:$0xff]  ;;  %v310_v22 = vld [vmem:[%s2887_s26 + $0xa9] sm:$0xff] }
  0x1e   : > { %v312_v23 = vld [vmem:[%s2887_s26 + $0xb9] sm:$0xff]  ;;  %v314_v24 = vld [vmem:[%s2887_s26 + $0xc9] sm:$0xff]  ;;  %v313_v25 = vld [vmem:[%s2887_s26 + $0xc1] sm:$0xff] }
  0x1f   : > { %375 = vrot.lane.b32.xlu1 %v292_v3, %s2819_s27  ;;  %371 = vrot.lane.b32.xlu0 %v290_v4, %s2819_s27  ;;  %v315_v26 = vld [vmem:[%s2887_s26 + $0xd1] sm:$0xff]  ;;  %v317_v27 = vld [vmem:[%s2887_s26 + $0xe1] sm:$0xff] }
  0x20   : > { %379 = vrot.lane.b32.xlu2 %v294_v5, %s2819_s27  ;;  %v316_v28 = vld [vmem:[%s2887_s26 + $0xd9] sm:$0xff]  ;;  %v318_v29 = vld [vmem:[%s2887_s26 + $0xe9] sm:$0xff]  ;;  %v319_v31 = vld [vmem:[%s2887_s26 + $0xf1] sm:$0xff] }
  0x21   : > { %v320_v30 = vld [vmem:[%s2887_s26 + $0xf9] sm:$0xff]  ;;  %v321_v32 = vld [vmem:[%s2887_s26 + $0x101] sm:$0xff]  ;;  %v210_v33 = vld [vmem:[%s2887_s26 + $0x10] sm:$0xff] }
  0x22   : > { %v208_v34 = vld [vmem:[%s2887_s26] sm:$0xff]  ;;  %251 = vst.msk [vmem:[#allocation2 + $0x10] sm:$0xff] %vm248_vm0, %v210_v33  ;;  %v323_v35 = vld [vmem:[%s2887_s26 + $0x111] sm:$0xff]  ;;  %v322_v36 = vld [vmem:[%s2887_s26 + $0x109] sm:$0xff] }
  0x23   : > { %249 = vst.msk [vmem:[#allocation2] sm:$0xff] %vm248_vm0, %v208_v34  ;;  %v324_v37 = vld [vmem:[%s2887_s26 + $0x119] sm:$0xff]  ;;  %v209_v40 = vld [vmem:[%s2887_s26 + $0x8] sm:$0xff]  ;;  %v327_v44 = vld [vmem:[%s2887_s26 + $0x131] sm:$0xff] }
  0x24   : > { %v212_v38 = vld [vmem:[%s2887_s26 + $0x20] sm:$0xff]  ;;  %v211_v39 = vld [vmem:[%s2887_s26 + $0x18] sm:$0xff]  ;;  %250 = vst.msk [vmem:[#allocation2 + $0x8] sm:$0xff] %vm248_vm0, %v209_v40  ;;  %v326_v41 = vld [vmem:[%s2887_s26 + $0x129] sm:$0xff] }
  0x25   : > { %253 = vst.msk [vmem:[#allocation2 + $0x20] sm:$0xff] %vm248_vm0, %v212_v38  ;;  %v325_v42 = vld [vmem:[%s2887_s26 + $0x121] sm:$0xff]  ;;  %v215_v46 = vld [vmem:[%s2887_s26 + $0x38] sm:$0xff]  ;;  %v214_v47 = vld [vmem:[%s2887_s26 + $0x30] sm:$0xff] }
  0x26   : > { %252 = vst.msk [vmem:[#allocation2 + $0x18] sm:$0xff] %vm248_vm0, %v211_v39  ;;  %v213_v45 = vld [vmem:[%s2887_s26 + $0x28] sm:$0xff]  ;;  %v328_v49 = vld [vmem:[%s2887_s26 + $0x139] sm:$0xff]  ;;  %v218_v53 = vld [vmem:[%s2887_s26 + $0x50] sm:$0xff] }
  0x27   : > { %383 = vrot.lane.b32.xlu1 %v296_v6, %s2819_s27  ;;  %381 = vrot.lane.b32.xlu0 %v295_v7, %s2819_s27  ;;  %254 = vst.msk [vmem:[#allocation2 + $0x28] sm:$0xff] %vm248_vm0, %v213_v45  ;;  %v530_v48 = vld [vmem:[%s2887_s26 + $0x2] sm:$0xff]  ;;  %v531_v51 = vld [vmem:[%s2887_s26 + $0xa] sm:$0xff] }
  0x28   : > { %385 = vrot.lane.b32.xlu2 %v297_v8, %s2819_s27  ;;  %256 = vst.msk [vmem:[#allocation2 + $0x38] sm:$0xff] %vm248_vm0, %v215_v46  ;;  %v216_v52 = vld [vmem:[%s2887_s26 + $0x40] sm:$0xff]  ;;  %v217_v54 = vld [vmem:[%s2887_s26 + $0x48] sm:$0xff]  ;;  %v532_v56 = vld [vmem:[%s2887_s26 + $0x12] sm:$0xff] }
  0x29   : > { %255 = vst.msk [vmem:[#allocation2 + $0x30] sm:$0xff] %vm248_vm0, %v214_v47  ;;  %v533_v55 = vld [vmem:[%s2887_s26 + $0x1a] sm:$0xff]  ;;  %v534_v58 = vld [vmem:[%s2887_s26 + $0x22] sm:$0xff]  ;;  %v536_v0 = vld [vmem:[%s2887_s26 + $0x32] sm:$0xff] }
  0x2a   : > { %257 = vst.msk [vmem:[#allocation2 + $0x40] sm:$0xff] %vm248_vm0, %v216_v52  ;;  %v219_v59 = vld [vmem:[%s2887_s26 + $0x58] sm:$0xff]  ;;  %v221_v62 = vld [vmem:[%s2887_s26 + $0x68] sm:$0xff]  ;;  %v220_v63 = vld [vmem:[%s2887_s26 + $0x60] sm:$0xff] }
  0x2b   : > { %259 = vst.msk [vmem:[#allocation2 + $0x50] sm:$0xff] %vm248_vm0, %v218_v53  ;;  %v535_v1 = vld [vmem:[%s2887_s26 + $0x2a] sm:$0xff]  ;;  %v537_v3 = vld [vmem:[%s2887_s26 + $0x3a] sm:$0xff]  ;;  %v550_v46 = vld [vmem:[%s2887_s26 + $0xa2] sm:$0xff] }
  0x2c   : > { %258 = vst.msk [vmem:[#allocation2 + $0x48] sm:$0xff] %vm248_vm0, %v217_v54  ;;  %v222_v4 = vld [vmem:[%s2887_s26 + $0x70] sm:$0xff]  ;;  %v224_v7 = vld [vmem:[%s2887_s26 + $0x80] sm:$0xff]  ;;  %v223_v8 = vld [vmem:[%s2887_s26 + $0x78] sm:$0xff] }
  0x2d   : > { %260 = vst.msk [vmem:[#allocation2 + $0x58] sm:$0xff] %vm248_vm0, %v219_v59  ;;  %v233_v34 = vld [vmem:[%s2887_s26 + $0xc8] sm:$0xff]  ;;  %v549_v39 = vld [vmem:[%s2887_s26 + $0x9a] sm:$0xff]  ;;  %v234_v40 = vld [vmem:[%s2887_s26 + $0xd0] sm:$0xff] }
  0x2e   : > { %262 = vst.msk [vmem:[#allocation2 + $0x68] sm:$0xff] %vm248_vm0, %v221_v62  ;;  %v551_v45 = vld [vmem:[%s2887_s26 + $0xaa] sm:$0xff]  ;;  %v239_v52 = vld [vmem:[%s2887_s26 + $0xf8] sm:$0xff]  ;;  %v554_v54 = vld [vmem:[%s2887_s26 + $0xc2] sm:$0xff] }
  0x2f   : > { %389 = vrot.lane.b32.xlu1 %v299_v9, %s2819_s27  ;;  %387 = vrot.lane.b32.xlu0 %v298_v10, %s2819_s27  ;;  %261 = vst.msk [vmem:[#allocation2 + $0x60] sm:$0xff] %vm248_vm0, %v220_v63  ;;  %v539_v9 = vld [vmem:[%s2887_s26 + $0x4a] sm:$0xff]  ;;  %v538_v10 = vld [vmem:[%s2887_s26 + $0x42] sm:$0xff] }
  0x30   : > { %391 = vrot.lane.b32.xlu2 %v300_v11, %s2819_s27  ;;  %263 = vst.msk [vmem:[#allocation2 + $0x70] sm:$0xff] %vm248_vm0, %v222_v4  ;;  %v238_v53 = vld [vmem:[%s2887_s26 + $0xf0] sm:$0xff]  ;;  %v241_v62 = vld [vmem:[%s2887_s26 + $0x108] sm:$0xff]  ;;  %v557_v63 = vld [vmem:[%s2887_s26 + $0xda] sm:$0xff] }
  0x31   : > { %265 = vst.msk [vmem:[#allocation2 + $0x80] sm:$0xff] %vm248_vm0, %v224_v7  ;;  %v244_v7 = vld [vmem:[%s2887_s26 + $0x120] sm:$0xff] }
  0x32   : > { %264 = vst.msk [vmem:[#allocation2 + $0x78] sm:$0xff] %vm248_vm0, %v223_v8  ;;  %v560_v8 = vld [vmem:[%s2887_s26 + $0xf2] sm:$0xff] }
  0x33   : > { %274 = vst.msk [vmem:[#allocation2 + $0xc8] sm:$0xff] %vm248_vm0, %v233_v34  ;;  %v773_v34 = vld [vmem:[%s2887_s26 + $0x24] sm:$0xff] }
  0x34   : > { %275 = vst.msk [vmem:[#allocation2 + $0xd0] sm:$0xff] %vm248_vm0, %v234_v40  ;;  %v776_v40 = vld [vmem:[%s2887_s26 + $0x3c] sm:$0xff] }
  0x35   : > { %280 = vst.msk [vmem:[#allocation2 + $0xf8] sm:$0xff] %vm248_vm0, %v239_v52  ;;  %v782_v52 = vld [vmem:[%s2887_s26 + $0x6c] sm:$0xff] }
  0x36   : > { %279 = vst.msk [vmem:[#allocation2 + $0xf0] sm:$0xff] %vm248_vm0, %v238_v53  ;;  %v781_v53 = vld [vmem:[%s2887_s26 + $0x64] sm:$0xff] }
  0x37   : > { %395 = vrot.lane.b32.xlu1 %v302_v12, %s2819_s27  ;;  %393 = vrot.lane.b32.xlu0 %v301_v13, %s2819_s27  ;;  %v540_v12 = vld [vmem:[%s2887_s26 + $0x52] sm:$0xff]  ;;  %v225_v13 = vld [vmem:[%s2887_s26 + $0x88] sm:$0xff]  ;;  %282 = vst.msk [vmem:[#allocation2 + $0x108] sm:$0xff] %vm248_vm0, %v241_v62 }
  0x38   : > { %397 = vrot.lane.b32.xlu2 %v303_v14, %s2819_s27  ;;  %266 = vst.msk [vmem:[#allocation2 + $0x88] sm:$0xff] %vm248_vm0, %v225_v13 }
  0x39   : > { %285 = vst.msk [vmem:[#allocation2 + $0x120] sm:$0xff] %vm248_vm0, %v244_v7  ;;  %v790_v7 = vld [vmem:[%s2887_s26 + $0xac] sm:$0xff] }
  0x3f   : > { %401 = vrot.lane.b32.xlu1 %v305_v15, %s2819_s27  ;;  %399 = vrot.lane.b32.xlu0 %v304_v16, %s2819_s27  ;;  %v227_v16 = vld [vmem:[%s2887_s26 + $0x98] sm:$0xff] }
  0x40   : > { %403 = vrot.lane.b32.xlu2 %v306_v17, %s2819_s27  ;;  %v226_v17 = vld [vmem:[%s2887_s26 + $0x90] sm:$0xff]  ;;  %268 = vst.msk [vmem:[#allocation2 + $0x98] sm:$0xff] %vm248_vm0, %v227_v16 }
  0x41   : > { %267 = vst.msk [vmem:[#allocation2 + $0x90] sm:$0xff] %vm248_vm0, %v226_v17  ;;  %v563_v16 = vld [vmem:[%s2887_s26 + $0x10a] sm:$0xff]  ;;  %v562_v17 = vld [vmem:[%s2887_s26 + $0x102] sm:$0xff] }
  0x47   : > { %407 = vrot.lane.b32.xlu1 %v308_v18, %s2819_s27  ;;  %405 = vrot.lane.b32.xlu0 %v307_v19, %s2819_s27  ;;  %v542_v18 = vld [vmem:[%s2887_s26 + $0x62] sm:$0xff]  ;;  %v541_v19 = vld [vmem:[%s2887_s26 + $0x5a] sm:$0xff] }
  0x48   : > { %409 = vrot.lane.b32.xlu2 %v309_v20, %s2819_s27 }
  0x4f   : > { %413 = vrot.lane.b32.xlu1 %v311_v21, %s2819_s27  ;;  %411 = vrot.lane.b32.xlu0 %v310_v22, %s2819_s27  ;;  %v543_v21 = vld [vmem:[%s2887_s26 + $0x6a] sm:$0xff]  ;;  %v228_v22 = vld [vmem:[%s2887_s26 + $0xa0] sm:$0xff] }
  0x50   : > { %415 = vrot.lane.b32.xlu2 %v312_v23, %s2819_s27  ;;  %269 = vst.msk [vmem:[#allocation2 + $0xa0] sm:$0xff] %vm248_vm0, %v228_v22  ;;  %v566_v22 = vld [vmem:[%s2887_s26 + $0x122] sm:$0xff] }
  0x57   : > { %419 = vrot.lane.b32.xlu1 %v314_v24, %s2819_s27  ;;  %417 = vrot.lane.b32.xlu0 %v313_v25, %s2819_s27  ;;  %v230_v25 = vld [vmem:[%s2887_s26 + $0xb0] sm:$0xff] }
  0x58   : > { %421 = vrot.lane.b32.xlu2 %v315_v26, %s2819_s27  ;;  %v229_v26 = vld [vmem:[%s2887_s26 + $0xa8] sm:$0xff]  ;;  %271 = vst.msk [vmem:[#allocation2 + $0xb0] sm:$0xff] %vm248_vm0, %v230_v25 }
  0x59   : > { %270 = vst.msk [vmem:[#allocation2 + $0xa8] sm:$0xff] %vm248_vm0, %v229_v26  ;;  %v567_v25 = vld [vmem:[%s2887_s26 + $0x12a] sm:$0xff] }
  0x5f   : > { %425 = vrot.lane.b32.xlu1 %v317_v27, %s2819_s27  ;;  %423 = vrot.lane.b32.xlu0 %v316_v28, %s2819_s27  ;;  %v545_v27 = vld [vmem:[%s2887_s26 + $0x7a] sm:$0xff]  ;;  %v544_v28 = vld [vmem:[%s2887_s26 + $0x72] sm:$0xff] }
  0x60   : > { %427 = vrot.lane.b32.xlu2 %v318_v29, %s2819_s27 }
  0x67   : > { %431 = vrot.lane.b32.xlu1 %v320_v30, %s2819_s27  ;;  %429 = vrot.lane.b32.xlu0 %v319_v31, %s2819_s27  ;;  %v546_v30 = vld [vmem:[%s2887_s26 + $0x82] sm:$0xff]  ;;  %v231_v31 = vld [vmem:[%s2887_s26 + $0xb8] sm:$0xff] }
  0x68   : > { %433 = vrot.lane.b32.xlu2 %v321_v32, %s2819_s27  ;;  %272 = vst.msk [vmem:[#allocation2 + $0xb8] sm:$0xff] %vm248_vm0, %v231_v31  ;;  %v771_v31 = vld [vmem:[%s2887_s26 + $0x14] sm:$0xff] }
  0x6f   : > { %437 = vrot.lane.b32.xlu1 %v323_v35, %s2819_s27  ;;  %435 = vrot.lane.b32.xlu0 %v322_v36, %s2819_s27  ;;  %v232_v35 = vld [vmem:[%s2887_s26 + $0xc0] sm:$0xff]  ;;  %v548_v36 = vld [vmem:[%s2887_s26 + $0x92] sm:$0xff] }
  0x70   : > { %439 = vrot.lane.b32.xlu2 %v324_v37, %s2819_s27  ;;  %v547_v37 = vld [vmem:[%s2887_s26 + $0x8a] sm:$0xff]  ;;  %273 = vst.msk [vmem:[#allocation2 + $0xc0] sm:$0xff] %vm248_vm0, %v232_v35  ;;  %v772_v35 = vld [vmem:[%s2887_s26 + $0x1c] sm:$0xff] }
  0x72   : > { %v378_v43 = vpop.permute.xlu2 %377 }
  0x73   : > { %494 = vst.msk [vmem:[#allocation2 + $0x20] sm:$0xff] %vm489_vm1, %v378_v43  ;;  %v236_v43 = vld [vmem:[%s2887_s26 + $0xe0] sm:$0xff] }
  0x74   : > { %277 = vst.msk [vmem:[#allocation2 + $0xe0] sm:$0xff] %vm248_vm0, %v236_v43  ;;  %v777_v43 = vld [vmem:[%s2887_s26 + $0x44] sm:$0xff] }
  0x77   : > { %443 = vrot.lane.b32.xlu1 %v326_v41, %s2819_s27  ;;  %441 = vrot.lane.b32.xlu0 %v325_v42, %s2819_s27 }
  0x78   : > { %445 = vrot.lane.b32.xlu2 %v327_v44, %s2819_s27  ;;  %v235_v44 = vld [vmem:[%s2887_s26 + $0xd8] sm:$0xff] }
  0x79   : > { %276 = vst.msk [vmem:[#allocation2 + $0xd8] sm:$0xff] %vm248_vm0, %v235_v44 }
  0x7a   : > { %v380_v50 = vpop.permute.xlu2 %379 }
  0x7b   : > { %495 = vst.msk [vmem:[#allocation2 + $0x28] sm:$0xff] %vm489_vm1, %v380_v50 }
  0x7f   : > { %610 = vrot.lane.b32.xlu1 %v530_v48, %s2820_s28  ;;  %447 = vrot.lane.b32.xlu0 %v328_v49, %s2819_s27  ;;  %v552_v48 = vld [vmem:[%s2887_s26 + $0xb2] sm:$0xff]  ;;  %v237_v49 = vld [vmem:[%s2887_s26 + $0xe8] sm:$0xff] }
  0x80   : > { %612 = vrot.lane.b32.xlu2 %v531_v51, %s2820_s28  ;;  %278 = vst.msk [vmem:[#allocation2 + $0xe8] sm:$0xff] %vm248_vm0, %v237_v49  ;;  %v780_v49 = vld [vmem:[%s2887_s26 + $0x5c] sm:$0xff] }
  0x82   : > { %v386_v57 = vpop.permute.xlu2 %385 }
  0x83   : > { %498 = vst.msk [vmem:[#allocation2 + $0x40] sm:$0xff] %vm489_vm1, %v386_v57  ;;  %v555_v57 = vld [vmem:[%s2887_s26 + $0xca] sm:$0xff] }
  0x87   : > { %616 = vrot.lane.b32.xlu1 %v533_v55, %s2820_s28  ;;  %614 = vrot.lane.b32.xlu0 %v532_v56, %s2820_s28  ;;  %v553_v55 = vld [vmem:[%s2887_s26 + $0xba] sm:$0xff] }
  0x88   : > { %618 = vrot.lane.b32.xlu2 %v534_v58, %s2820_s28  ;;  %v240_v58 = vld [vmem:[%s2887_s26 + $0x100] sm:$0xff] }
  0x89   : > { %v374_v60 = vpop.permute.xlu1 %373  ;;  %v370_v61 = vpop.permute.xlu0 %369  ;;  %281 = vst.msk [vmem:[#allocation2 + $0x100] sm:$0xff] %vm248_vm0, %v240_v58  ;;  %v785_v58 = vld [vmem:[%s2887_s26 + $0x84] sm:$0xff] }
  0x8a   : > { %492 = vst.msk [vmem:[#allocation2 + $0x10] sm:$0xff] %vm489_vm1, %v374_v60  ;;  %v392_v2 = vpop.permute.xlu2 %391 }
  0x8b   : > { %490 = vst.msk [vmem:[#allocation2] sm:$0xff] %vm489_vm1, %v370_v61  ;;  %v242_v61 = vld [vmem:[%s2887_s26 + $0x110] sm:$0xff] }
  0x8c   : > { %501 = vst.msk [vmem:[#allocation2 + $0x58] sm:$0xff] %vm489_vm1, %v392_v2  ;;  %v558_v2 = vld [vmem:[%s2887_s26 + $0xe2] sm:$0xff] }
  0x8d   : > { %283 = vst.msk [vmem:[#allocation2 + $0x110] sm:$0xff] %vm248_vm0, %v242_v61  ;;  %v786_v61 = vld [vmem:[%s2887_s26 + $0x8c] sm:$0xff] }
  0x8f   : > { %622 = vrot.lane.b32.xlu1 %v536_v0, %s2820_s28  ;;  %620 = vrot.lane.b32.xlu0 %v535_v1, %s2820_s28  ;;  %v556_v0 = vld [vmem:[%s2887_s26 + $0xd2] sm:$0xff] }
  0x90   : > { %624 = vrot.lane.b32.xlu2 %v537_v3, %s2820_s28  ;;  %v243_v3 = vld [vmem:[%s2887_s26 + $0x118] sm:$0xff] }
  0x91   : > { %v376_v5 = vpop.permute.xlu1 %375  ;;  %v372_v6 = vpop.permute.xlu0 %371  ;;  %284 = vst.msk [vmem:[#allocation2 + $0x118] sm:$0xff] %vm248_vm0, %v243_v3  ;;  %v789_v3 = vld [vmem:[%s2887_s26 + $0xa4] sm:$0xff] }
  0x92   : > { %493 = vst.msk [vmem:[#allocation2 + $0x18] sm:$0xff] %vm489_vm1, %v376_v5  ;;  %v398_v11 = vpop.permute.xlu2 %397 }
  0x93   : > { %491 = vst.msk [vmem:[#allocation2 + $0x8] sm:$0xff] %vm489_vm1, %v372_v6  ;;  %v245_v6 = vld [vmem:[%s2887_s26 + $0x128] sm:$0xff] }
  0x94   : > { %504 = vst.msk [vmem:[#allocation2 + $0x70] sm:$0xff] %vm489_vm1, %v398_v11  ;;  %v561_v11 = vld [vmem:[%s2887_s26 + $0xfa] sm:$0xff] }
  0x95   : > { %286 = vst.msk [vmem:[#allocation2 + $0x128] sm:$0xff] %vm248_vm0, %v245_v6  ;;  %v791_v6 = vld [vmem:[%s2887_s26 + $0xb4] sm:$0xff] }
  0x97   : > { %628 = vrot.lane.b32.xlu1 %v539_v9, %s2820_s28  ;;  %626 = vrot.lane.b32.xlu0 %v538_v10, %s2820_s28  ;;  %v559_v9 = vld [vmem:[%s2887_s26 + $0xea] sm:$0xff] }
  0x98   : > { %630 = vrot.lane.b32.xlu2 %v540_v12, %s2820_s28  ;;  %v246_v12 = vld [vmem:[%s2887_s26 + $0x130] sm:$0xff] }
  0x99   : > { %v384_v14 = vpop.permute.xlu1 %383  ;;  %v382_v15 = vpop.permute.xlu0 %381  ;;  %287 = vst.msk [vmem:[#allocation2 + $0x130] sm:$0xff] %vm248_vm0, %v246_v12  ;;  %v794_v12 = vld [vmem:[%s2887_s26 + $0xcc] sm:$0xff] }
  0x9a   : > { %497 = vst.msk [vmem:[#allocation2 + $0x38] sm:$0xff] %vm489_vm1, %v384_v14  ;;  %v404_v20 = vpop.permute.xlu2 %403 }
  0x9b   : > { %496 = vst.msk [vmem:[#allocation2 + $0x30] sm:$0xff] %vm489_vm1, %v382_v15  ;;  %v247_v15 = vld [vmem:[%s2887_s26 + $0x138] sm:$0xff] }
  0x9c   : > { %507 = vst.msk [vmem:[#allocation2 + $0x88] sm:$0xff] %vm489_vm1, %v404_v20 }
  0x9d   : > { %288 = vst.msk [vmem:[#allocation2 + $0x138] sm:$0xff] %vm248_vm0, %v247_v15  ;;  %v795_v15 = vld [vmem:[%s2887_s26 + $0xd4] sm:$0xff] }
  0x9f   : > { %634 = vrot.lane.b32.xlu1 %v542_v18, %s2820_s28  ;;  %632 = vrot.lane.b32.xlu0 %v541_v19, %s2820_s28  ;;  %v564_v19 = vld [vmem:[%s2887_s26 + $0x112] sm:$0xff] }
  0xa0   : > { %636 = vrot.lane.b32.xlu2 %v543_v21, %s2820_s28 }
  0xa1   : > { %v390_v23 = vpop.permute.xlu1 %389  ;;  %v388_v24 = vpop.permute.xlu0 %387 }
  0xa2   : > { %500 = vst.msk [vmem:[#allocation2 + $0x50] sm:$0xff] %vm489_vm1, %v390_v23  ;;  %v410_v29 = vpop.permute.xlu2 %409  ;;  %v565_v23 = vld [vmem:[%s2887_s26 + $0x11a] sm:$0xff] }
  0xa3   : > { %499 = vst.msk [vmem:[#allocation2 + $0x48] sm:$0xff] %vm489_vm1, %v388_v24 }
  0xa4   : > { %510 = vst.msk [vmem:[#allocation2 + $0xa0] sm:$0xff] %vm489_vm1, %v410_v29  ;;  %v568_v29 = vld [vmem:[%s2887_s26 + $0x132] sm:$0xff] }
  0xa7   : > { %640 = vrot.lane.b32.xlu1 %v545_v27, %s2820_s28  ;;  %638 = vrot.lane.b32.xlu0 %v544_v28, %s2820_s28  ;;  %v569_v28 = vld [vmem:[%s2887_s26 + $0x13a] sm:$0xff] }
  0xa8   : > { %642 = vrot.lane.b32.xlu2 %v546_v30, %s2820_s28 }
  0xa9   : > { %v396_v32 = vpop.permute.xlu1 %395  ;;  %v394_v33 = vpop.permute.xlu0 %393 }
  0xaa   : > { %503 = vst.msk [vmem:[#allocation2 + $0x68] sm:$0xff] %vm489_vm1, %v396_v32  ;;  %v416_v38 = vpop.permute.xlu2 %415 }
  0xab   : > { %502 = vst.msk [vmem:[#allocation2 + $0x60] sm:$0xff] %vm489_vm1, %v394_v33 }
  0xac   : > { %513 = vst.msk [vmem:[#allocation2 + $0xb8] sm:$0xff] %vm489_vm1, %v416_v38 }
  0xaf   : > { %646 = vrot.lane.b32.xlu1 %v548_v36, %s2820_s28  ;;  %644 = vrot.lane.b32.xlu0 %v547_v37, %s2820_s28  ;;  %v774_v37 = vld [vmem:[%s2887_s26 + $0x2c] sm:$0xff] }
  0xb0   : > { %648 = vrot.lane.b32.xlu2 %v549_v39, %s2820_s28 }
  0xb1   : > { %v402_v41 = vpop.permute.xlu1 %401  ;;  %v400_v42 = vpop.permute.xlu0 %399 }
  0xb2   : > { %506 = vst.msk [vmem:[#allocation2 + $0x80] sm:$0xff] %vm489_vm1, %v402_v41  ;;  %v422_v47 = vpop.permute.xlu2 %421  ;;  %v775_v41 = vld [vmem:[%s2887_s26 + $0x34] sm:$0xff] }
  0xb3   : > { %505 = vst.msk [vmem:[#allocation2 + $0x78] sm:$0xff] %vm489_vm1, %v400_v42 }
  0xb4   : > { %516 = vst.msk [vmem:[#allocation2 + $0xd0] sm:$0xff] %vm489_vm1, %v422_v47  ;;  %v778_v47 = vld [vmem:[%s2887_s26 + $0x4c] sm:$0xff] }
  0xb7   : > { %652 = vrot.lane.b32.xlu1 %v551_v45, %s2820_s28  ;;  %650 = vrot.lane.b32.xlu0 %v550_v46, %s2820_s28  ;;  %v779_v46 = vld [vmem:[%s2887_s26 + $0x54] sm:$0xff] }
  0xb8   : > { %654 = vrot.lane.b32.xlu2 %v552_v48, %s2820_s28 }
  0xb9   : > { %v408_v50 = vpop.permute.xlu1 %407  ;;  %v406_v51 = vpop.permute.xlu0 %405 }
  0xba   : > { %509 = vst.msk [vmem:[#allocation2 + $0x98] sm:$0xff] %vm489_vm1, %v408_v50  ;;  %v428_v56 = vpop.permute.xlu2 %427 }
  0xbb   : > { %508 = vst.msk [vmem:[#allocation2 + $0x90] sm:$0xff] %vm489_vm1, %v406_v51 }
  0xbc   : > { %519 = vst.msk [vmem:[#allocation2 + $0xe8] sm:$0xff] %vm489_vm1, %v428_v56 }
  0xbf   : > { %658 = vrot.lane.b32.xlu1 %v554_v54, %s2820_s28  ;;  %656 = vrot.lane.b32.xlu0 %v553_v55, %s2820_s28  ;;  %v783_v55 = vld [vmem:[%s2887_s26 + $0x74] sm:$0xff] }
  0xc0   : > { %660 = vrot.lane.b32.xlu2 %v555_v57, %s2820_s28 }
  0xc1   : > { %v414_v59 = vpop.permute.xlu1 %413  ;;  %v412_v60 = vpop.permute.xlu0 %411 }
  0xc2   : > { %512 = vst.msk [vmem:[#allocation2 + $0xb0] sm:$0xff] %vm489_vm1, %v414_v59  ;;  %v434_v1 = vpop.permute.xlu2 %433  ;;  %v784_v59 = vld [vmem:[%s2887_s26 + $0x7c] sm:$0xff] }
  0xc3   : > { %511 = vst.msk [vmem:[#allocation2 + $0xa8] sm:$0xff] %vm489_vm1, %v412_v60 }
  0xc4   : > { %522 = vst.msk [vmem:[#allocation2 + $0x100] sm:$0xff] %vm489_vm1, %v434_v1  ;;  %v787_v1 = vld [vmem:[%s2887_s26 + $0x94] sm:$0xff] }
  0xc7   : > { %664 = vrot.lane.b32.xlu1 %v557_v63, %s2820_s28  ;;  %662 = vrot.lane.b32.xlu0 %v556_v0, %s2820_s28  ;;  %v788_v0 = vld [vmem:[%s2887_s26 + $0x9c] sm:$0xff] }
  0xc8   : > { %666 = vrot.lane.b32.xlu2 %v558_v2, %s2820_s28 }
  0xc9   : > { %v420_v4 = vpop.permute.xlu1 %419  ;;  %v418_v5 = vpop.permute.xlu0 %417 }
  0xca   : > { %515 = vst.msk [vmem:[#allocation2 + $0xc8] sm:$0xff] %vm489_vm1, %v420_v4  ;;  %v440_v10 = vpop.permute.xlu2 %439 }
  0xcb   : > { %514 = vst.msk [vmem:[#allocation2 + $0xc0] sm:$0xff] %vm489_vm1, %v418_v5 }
  0xcc   : > { %525 = vst.msk [vmem:[#allocation2 + $0x118] sm:$0xff] %vm489_vm1, %v440_v10 }
  0xcf   : > { %670 = vrot.lane.b32.xlu1 %v560_v8, %s2820_s28  ;;  %668 = vrot.lane.b32.xlu0 %v559_v9, %s2820_s28  ;;  %v792_v9 = vld [vmem:[%s2887_s26 + $0xbc] sm:$0xff] }
  0xd0   : > { %672 = vrot.lane.b32.xlu2 %v561_v11, %s2820_s28 }
  0xd1   : > { %v426_v13 = vpop.permute.xlu1 %425  ;;  %v424_v14 = vpop.permute.xlu0 %423 }
  0xd2   : > { %518 = vst.msk [vmem:[#allocation2 + $0xe0] sm:$0xff] %vm489_vm1, %v426_v13  ;;  %v446_v18 = vpop.permute.xlu2 %445  ;;  %v793_v13 = vld [vmem:[%s2887_s26 + $0xc4] sm:$0xff] }
  0xd3   : > { %517 = vst.msk [vmem:[#allocation2 + $0xd8] sm:$0xff] %vm489_vm1, %v424_v14 }
  0xd4   : > { %528 = vst.msk [vmem:[#allocation2 + $0x130] sm:$0xff] %vm489_vm1, %v446_v18  ;;  %v797_v18 = vld [vmem:[%s2887_s26 + $0xe4] sm:$0xff] }
  0xd7   : > { %676 = vrot.lane.b32.xlu1 %v563_v16, %s2820_s28  ;;  %674 = vrot.lane.b32.xlu0 %v562_v17, %s2820_s28 }
  0xd8   : > { %678 = vrot.lane.b32.xlu2 %v564_v19, %s2820_s28  ;;  %v796_v19 = vld [vmem:[%s2887_s26 + $0xdc] sm:$0xff] }
  0xd9   : > { %v432_v20 = vpop.permute.xlu1 %431  ;;  %v430_v21 = vpop.permute.xlu0 %429 }
  0xda   : > { %521 = vst.msk [vmem:[#allocation2 + $0xf8] sm:$0xff] %vm489_vm1, %v432_v20  ;;  %v613_v24 = vpop.permute.xlu2 %612 }
  0xdb   : > { %520 = vst.msk [vmem:[#allocation2 + $0xf0] sm:$0xff] %vm489_vm1, %v430_v21  ;;  %v798_v21 = vld [vmem:[%s2887_s26 + $0xec] sm:$0xff] }
  0xdc   : > { %732 = vst.msk [vmem:[#allocation2 + $0x8] sm:$0xff] %vm730_vm2, %v613_v24  ;;  %v800_v24 = vld [vmem:[%s2887_s26 + $0xfc] sm:$0xff] }
  0xdf   : > { %682 = vrot.lane.b32.xlu1 %v566_v22, %s2820_s28  ;;  %680 = vrot.lane.b32.xlu0 %v565_v23, %s2820_s28 }
  0xe0   : > { %684 = vrot.lane.b32.xlu2 %v567_v25, %s2820_s28  ;;  %v799_v25 = vld [vmem:[%s2887_s26 + $0xf4] sm:$0xff] }
  0xe1   : > { %v438_v26 = vpop.permute.xlu1 %437  ;;  %v436_v27 = vpop.permute.xlu0 %435 }
  0xe2   : > { %524 = vst.msk [vmem:[#allocation2 + $0x110] sm:$0xff] %vm489_vm1, %v438_v26  ;;  %v619_v30 = vpop.permute.xlu2 %618 }
  0xe3   : > { %523 = vst.msk [vmem:[#allocation2 + $0x108] sm:$0xff] %vm489_vm1, %v436_v27  ;;  %v801_v27 = vld [vmem:[%s2887_s26 + $0x104] sm:$0xff] }
  0xe4   : > { %735 = vst.msk [vmem:[#allocation2 + $0x20] sm:$0xff] %vm730_vm2, %v619_v30  ;;  %v803_v30 = vld [vmem:[%s2887_s26 + $0x114] sm:$0xff] }
  0xe7   : > { %688 = vrot.lane.b32.xlu1 %v569_v28, %s2820_s28  ;;  %686 = vrot.lane.b32.xlu0 %v568_v29, %s2820_s28 }
  0xe8   : > { %851 = vrot.lane.b32.xlu2 %v771_v31, %s2821_s29  ;;  %v802_v31 = vld [vmem:[%s2887_s26 + $0x10c] sm:$0xff] }
  0xe9   : > { %v444_v32 = vpop.permute.xlu1 %443  ;;  %v442_v33 = vpop.permute.xlu0 %441 }
  0xea   : > { %527 = vst.msk [vmem:[#allocation2 + $0x128] sm:$0xff] %vm489_vm1, %v444_v32  ;;  %v625_v36 = vpop.permute.xlu2 %624 }
  0xeb   : > { %526 = vst.msk [vmem:[#allocation2 + $0x120] sm:$0xff] %vm489_vm1, %v442_v33  ;;  %v804_v33 = vld [vmem:[%s2887_s26 + $0x11c] sm:$0xff] }
  0xec   : > { %738 = vst.msk [vmem:[#allocation2 + $0x38] sm:$0xff] %vm730_vm2, %v625_v36  ;;  %v806_v36 = vld [vmem:[%s2887_s26 + $0x12c] sm:$0xff] }
  0xef   : > { %855 = vrot.lane.b32.xlu1 %v773_v34, %s2821_s29  ;;  %853 = vrot.lane.b32.xlu0 %v772_v35, %s2821_s29 }
  0xf0   : > { %857 = vrot.lane.b32.xlu2 %v774_v37, %s2821_s29  ;;  %v805_v37 = vld [vmem:[%s2887_s26 + $0x124] sm:$0xff] }
  0xf1   : > { %v611_v38 = vpop.permute.xlu1 %610  ;;  %v448_v39 = vpop.permute.xlu0 %447 }
  0xf2   : > { %731 = vst.msk [vmem:[#allocation2] sm:$0xff] %vm730_vm2, %v611_v38  ;;  %v631_v42 = vpop.permute.xlu2 %630 }
  0xf3   : > { %529 = vst.msk [vmem:[#allocation2 + $0x138] sm:$0xff] %vm489_vm1, %v448_v39  ;;  %v807_v39 = vld [vmem:[%s2887_s26 + $0x134] sm:$0xff] }
  0xf4   : > { %741 = vst.msk [vmem:[#allocation2 + $0x50] sm:$0xff] %vm730_vm2, %v631_v42  ;;  %v809_v42 = vld [vmem:[%s2887_s26 + $0x144] sm:$0xff] }
  0xf7   : > { %861 = vrot.lane.b32.xlu1 %v776_v40, %s2821_s29  ;;  %859 = vrot.lane.b32.xlu0 %v775_v41, %s2821_s29 }
  0xf8   : > { %863 = vrot.lane.b32.xlu2 %v777_v43, %s2821_s29  ;;  %v808_v43 = vld [vmem:[%s2887_s26 + $0x13c] sm:$0xff] }
  0xf9   : > { %v617_v44 = vpop.permute.xlu1 %616  ;;  %v615_v45 = vpop.permute.xlu0 %614 }
  0xfa   : > { %734 = vst.msk [vmem:[#allocation2 + $0x18] sm:$0xff] %vm730_vm2, %v617_v44  ;;  %v637_v48 = vpop.permute.xlu2 %636 }
  0xfb   : > { %733 = vst.msk [vmem:[#allocation2 + $0x10] sm:$0xff] %vm730_vm2, %v615_v45  ;;  %v810_v45 = vld [vmem:[%s2887_s26 + $0x14c] sm:$0xff] }
  0xfc   : > { %744 = vst.msk [vmem:[#allocation2 + $0x68] sm:$0xff] %vm730_vm2, %v637_v48  ;;  %v1013_v48 = vld [vmem:[%s2887_s26 + $0x1d] sm:$0xff] }
  0xff   : > { %867 = vrot.lane.b32.xlu1 %v779_v46, %s2821_s29  ;;  %865 = vrot.lane.b32.xlu0 %v778_v47, %s2821_s29 }
 0x100   : > { %869 = vrot.lane.b32.xlu2 %v780_v49, %s2821_s29  ;;  %v1012_v49 = vld [vmem:[%s2887_s26 + $0x15] sm:$0xff] }
 0x101   : > { %v623_v50 = vpop.permute.xlu1 %622  ;;  %v621_v51 = vpop.permute.xlu0 %620 }
 0x102   : > { %737 = vst.msk [vmem:[#allocation2 + $0x30] sm:$0xff] %vm730_vm2, %v623_v50  ;;  %v643_v54 = vpop.permute.xlu2 %642 }
 0x103   : > { %736 = vst.msk [vmem:[#allocation2 + $0x28] sm:$0xff] %vm730_vm2, %v621_v51  ;;  %v1014_v51 = vld [vmem:[%s2887_s26 + $0x25] sm:$0xff] }
 0x104   : > { %747 = vst.msk [vmem:[#allocation2 + $0x80] sm:$0xff] %vm730_vm2, %v643_v54  ;;  %v1016_v54 = vld [vmem:[%s2887_s26 + $0x35] sm:$0xff] }
 0x107   : > { %873 = vrot.lane.b32.xlu1 %v782_v52, %s2821_s29  ;;  %871 = vrot.lane.b32.xlu0 %v781_v53, %s2821_s29 }
 0x108   : > { %875 = vrot.lane.b32.xlu2 %v783_v55, %s2821_s29  ;;  %v1015_v55 = vld [vmem:[%s2887_s26 + $0x2d] sm:$0xff] }
 0x109   : > { %v629_v56 = vpop.permute.xlu1 %628  ;;  %v627_v57 = vpop.permute.xlu0 %626 }
 0x10a   : > { %740 = vst.msk [vmem:[#allocation2 + $0x48] sm:$0xff] %vm730_vm2, %v629_v56  ;;  %v649_v60 = vpop.permute.xlu2 %648 }
 0x10b   : > { %739 = vst.msk [vmem:[#allocation2 + $0x40] sm:$0xff] %vm730_vm2, %v627_v57  ;;  %v1017_v57 = vld [vmem:[%s2887_s26 + $0x3d] sm:$0xff] }
 0x10c   : > { %750 = vst.msk [vmem:[#allocation2 + $0x98] sm:$0xff] %vm730_vm2, %v649_v60  ;;  %v1019_v60 = vld [vmem:[%s2887_s26 + $0x4d] sm:$0xff] }
 0x10f   : > { %879 = vrot.lane.b32.xlu1 %v785_v58, %s2821_s29  ;;  %877 = vrot.lane.b32.xlu0 %v784_v59, %s2821_s29 }
 0x110   : > { %881 = vrot.lane.b32.xlu2 %v786_v61, %s2821_s29  ;;  %v1018_v61 = vld [vmem:[%s2887_s26 + $0x45] sm:$0xff] }
 0x111   : > { %v635_v62 = vpop.permute.xlu1 %634  ;;  %v633_v63 = vpop.permute.xlu0 %632 }
 0x112   : > { %743 = vst.msk [vmem:[#allocation2 + $0x60] sm:$0xff] %vm730_vm2, %v635_v62  ;;  %v655_v2 = vpop.permute.xlu2 %654 }
 0x113   : > { %742 = vst.msk [vmem:[#allocation2 + $0x58] sm:$0xff] %vm730_vm2, %v633_v63  ;;  %v1020_v63 = vld [vmem:[%s2887_s26 + $0x55] sm:$0xff] }
 0x114   : > { %753 = vst.msk [vmem:[#allocation2 + $0xb0] sm:$0xff] %vm730_vm2, %v655_v2  ;;  %v1022_v2 = vld [vmem:[%s2887_s26 + $0x65] sm:$0xff] }
 0x117   : > { %885 = vrot.lane.b32.xlu1 %v788_v0, %s2821_s29  ;;  %883 = vrot.lane.b32.xlu0 %v787_v1, %s2821_s29 }
 0x118   : > { %887 = vrot.lane.b32.xlu2 %v789_v3, %s2821_s29  ;;  %v1021_v3 = vld [vmem:[%s2887_s26 + $0x5d] sm:$0xff] }
 0x119   : > { %v641_v4 = vpop.permute.xlu1 %640  ;;  %v639_v5 = vpop.permute.xlu0 %638 }
 0x11a   : > { %746 = vst.msk [vmem:[#allocation2 + $0x78] sm:$0xff] %vm730_vm2, %v641_v4  ;;  %v661_v8 = vpop.permute.xlu2 %660 }
 0x11b   : > { %745 = vst.msk [vmem:[#allocation2 + $0x70] sm:$0xff] %vm730_vm2, %v639_v5  ;;  %v1023_v5 = vld [vmem:[%s2887_s26 + $0x6d] sm:$0xff] }
 0x11c   : > { %756 = vst.msk [vmem:[#allocation2 + $0xc8] sm:$0xff] %vm730_vm2, %v661_v8  ;;  %v1025_v8 = vld [vmem:[%s2887_s26 + $0x7d] sm:$0xff] }
 0x11f   : > { %891 = vrot.lane.b32.xlu1 %v791_v6, %s2821_s29  ;;  %889 = vrot.lane.b32.xlu0 %v790_v7, %s2821_s29 }
 0x120   : > { %893 = vrot.lane.b32.xlu2 %v792_v9, %s2821_s29  ;;  %v1024_v9 = vld [vmem:[%s2887_s26 + $0x75] sm:$0xff] }
 0x121   : > { %v647_v10 = vpop.permute.xlu1 %646  ;;  %v645_v11 = vpop.permute.xlu0 %644 }
 0x122   : > { %749 = vst.msk [vmem:[#allocation2 + $0x90] sm:$0xff] %vm730_vm2, %v647_v10  ;;  %v667_v14 = vpop.permute.xlu2 %666 }
 0x123   : > { %748 = vst.msk [vmem:[#allocation2 + $0x88] sm:$0xff] %vm730_vm2, %v645_v11  ;;  %v1026_v11 = vld [vmem:[%s2887_s26 + $0x85] sm:$0xff] }
 0x124   : > { %759 = vst.msk [vmem:[#allocation2 + $0xe0] sm:$0xff] %vm730_vm2, %v667_v14  ;;  %v1028_v14 = vld [vmem:[%s2887_s26 + $0x95] sm:$0xff] }
 0x127   : > { %897 = vrot.lane.b32.xlu1 %v794_v12, %s2821_s29  ;;  %895 = vrot.lane.b32.xlu0 %v793_v13, %s2821_s29 }
 0x128   : > { %899 = vrot.lane.b32.xlu2 %v795_v15, %s2821_s29  ;;  %v1027_v15 = vld [vmem:[%s2887_s26 + $0x8d] sm:$0xff] }
 0x129   : > { %v653_v16 = vpop.permute.xlu1 %652  ;;  %v651_v17 = vpop.permute.xlu0 %650 }
 0x12a   : > { %752 = vst.msk [vmem:[#allocation2 + $0xa8] sm:$0xff] %vm730_vm2, %v653_v16  ;;  %v673_v20 = vpop.permute.xlu2 %672 }
 0x12b   : > { %751 = vst.msk [vmem:[#allocation2 + $0xa0] sm:$0xff] %vm730_vm2, %v651_v17  ;;  %v1029_v17 = vld [vmem:[%s2887_s26 + $0x9d] sm:$0xff] }
 0x12c   : > { %762 = vst.msk [vmem:[#allocation2 + $0xf8] sm:$0xff] %vm730_vm2, %v673_v20  ;;  %v1031_v20 = vld [vmem:[%s2887_s26 + $0xad] sm:$0xff] }
 0x12f   : > { %903 = vrot.lane.b32.xlu1 %v797_v18, %s2821_s29  ;;  %901 = vrot.lane.b32.xlu0 %v796_v19, %s2821_s29 }
 0x130   : > { %905 = vrot.lane.b32.xlu2 %v798_v21, %s2821_s29  ;;  %v1030_v21 = vld [vmem:[%s2887_s26 + $0xa5] sm:$0xff] }
 0x131   : > { %v659_v22 = vpop.permute.xlu1 %658  ;;  %v657_v23 = vpop.permute.xlu0 %656 }
 0x132   : > { %755 = vst.msk [vmem:[#allocation2 + $0xc0] sm:$0xff] %vm730_vm2, %v659_v22  ;;  %v679_v26 = vpop.permute.xlu2 %678 }
 0x133   : > { %754 = vst.msk [vmem:[#allocation2 + $0xb8] sm:$0xff] %vm730_vm2, %v657_v23  ;;  %v1032_v23 = vld [vmem:[%s2887_s26 + $0xb5] sm:$0xff] }
 0x134   : > { %765 = vst.msk [vmem:[#allocation2 + $0x110] sm:$0xff] %vm730_vm2, %v679_v26  ;;  %v1034_v26 = vld [vmem:[%s2887_s26 + $0xc5] sm:$0xff] }
 0x137   : > { %909 = vrot.lane.b32.xlu1 %v800_v24, %s2821_s29  ;;  %907 = vrot.lane.b32.xlu0 %v799_v25, %s2821_s29 }
 0x138   : > { %911 = vrot.lane.b32.xlu2 %v801_v27, %s2821_s29  ;;  %v1033_v27 = vld [vmem:[%s2887_s26 + $0xbd] sm:$0xff] }
 0x139   : > { %v665_v28 = vpop.permute.xlu1 %664  ;;  %v663_v29 = vpop.permute.xlu0 %662 }
 0x13a   : > { %758 = vst.msk [vmem:[#allocation2 + $0xd8] sm:$0xff] %vm730_vm2, %v665_v28  ;;  %v685_v32 = vpop.permute.xlu2 %684 }
 0x13b   : > { %757 = vst.msk [vmem:[#allocation2 + $0xd0] sm:$0xff] %vm730_vm2, %v663_v29  ;;  %v1035_v29 = vld [vmem:[%s2887_s26 + $0xcd] sm:$0xff] }
 0x13c   : > { %768 = vst.msk [vmem:[#allocation2 + $0x128] sm:$0xff] %vm730_vm2, %v685_v32  ;;  %v1037_v32 = vld [vmem:[%s2887_s26 + $0xdd] sm:$0xff] }
 0x13f   : > { %915 = vrot.lane.b32.xlu1 %v803_v30, %s2821_s29  ;;  %913 = vrot.lane.b32.xlu0 %v802_v31, %s2821_s29 }
 0x140   : > { %917 = vrot.lane.b32.xlu2 %v804_v33, %s2821_s29  ;;  %v1036_v33 = vld [vmem:[%s2887_s26 + $0xd5] sm:$0xff] }
 0x141   : > { %v671_v34 = vpop.permute.xlu1 %670  ;;  %v669_v35 = vpop.permute.xlu0 %668 }
 0x142   : > { %761 = vst.msk [vmem:[#allocation2 + $0xf0] sm:$0xff] %vm730_vm2, %v671_v34  ;;  %v852_v38 = vpop.permute.xlu2 %851 }
 0x143   : > { %760 = vst.msk [vmem:[#allocation2 + $0xe8] sm:$0xff] %vm730_vm2, %v669_v35  ;;  %v1038_v35 = vld [vmem:[%s2887_s26 + $0xe5] sm:$0xff] }
 0x144   : > { %972 = vst.msk [vmem:[#allocation2] sm:$0xff] %vm971_vm3, %v852_v38  ;;  %v1040_v38 = vld [vmem:[%s2887_s26 + $0xf5] sm:$0xff] }
 0x147   : > { %921 = vrot.lane.b32.xlu1 %v806_v36, %s2821_s29  ;;  %919 = vrot.lane.b32.xlu0 %v805_v37, %s2821_s29 }
 0x148   : > { %923 = vrot.lane.b32.xlu2 %v807_v39, %s2821_s29  ;;  %v1039_v39 = vld [vmem:[%s2887_s26 + $0xed] sm:$0xff] }
 0x149   : > { %v677_v40 = vpop.permute.xlu1 %676  ;;  %v675_v41 = vpop.permute.xlu0 %674 }
 0x14a   : > { %764 = vst.msk [vmem:[#allocation2 + $0x108] sm:$0xff] %vm730_vm2, %v677_v40  ;;  %v858_v44 = vpop.permute.xlu2 %857 }
 0x14b   : > { %763 = vst.msk [vmem:[#allocation2 + $0x100] sm:$0xff] %vm730_vm2, %v675_v41  ;;  %v1041_v41 = vld [vmem:[%s2887_s26 + $0xfd] sm:$0xff] }
 0x14c   : > { %975 = vst.msk [vmem:[#allocation2 + $0x18] sm:$0xff] %vm971_vm3, %v858_v44  ;;  %v1043_v44 = vld [vmem:[%s2887_s26 + $0x10d] sm:$0xff] }
 0x14f   : > { %927 = vrot.lane.b32.xlu1 %v809_v42, %s2821_s29  ;;  %925 = vrot.lane.b32.xlu0 %v808_v43, %s2821_s29 }
 0x150   : > { %929 = vrot.lane.b32.xlu2 %v810_v45, %s2821_s29  ;;  %v1042_v45 = vld [vmem:[%s2887_s26 + $0x105] sm:$0xff] }
 0x151   : > { %v683_v46 = vpop.permute.xlu1 %682  ;;  %v681_v47 = vpop.permute.xlu0 %680 }
 0x152   : > { %767 = vst.msk [vmem:[#allocation2 + $0x120] sm:$0xff] %vm730_vm2, %v683_v46  ;;  %v864_v50 = vpop.permute.xlu2 %863 }
 0x153   : > { %766 = vst.msk [vmem:[#allocation2 + $0x118] sm:$0xff] %vm730_vm2, %v681_v47  ;;  %v1044_v47 = vld [vmem:[%s2887_s26 + $0x115] sm:$0xff] }
 0x154   : > { %978 = vst.msk [vmem:[#allocation2 + $0x30] sm:$0xff] %vm971_vm3, %v864_v50  ;;  %v1046_v50 = vld [vmem:[%s2887_s26 + $0x125] sm:$0xff] }
 0x157   : > { %1094 = vrot.lane.b32.xlu1 %v1013_v48, %s2822_s30  ;;  %1092 = vrot.lane.b32.xlu0 %v1012_v49, %s2822_s30 }
 0x158   : > { %1096 = vrot.lane.b32.xlu2 %v1014_v51, %s2822_s30  ;;  %v1045_v51 = vld [vmem:[%s2887_s26 + $0x11d] sm:$0xff] }
 0x159   : > { %v689_v52 = vpop.permute.xlu1 %688  ;;  %v687_v53 = vpop.permute.xlu0 %686 }
 0x15a   : > { %770 = vst.msk [vmem:[#allocation2 + $0x138] sm:$0xff] %vm730_vm2, %v689_v52  ;;  %v870_v56 = vpop.permute.xlu2 %869 }
 0x15b   : > { %769 = vst.msk [vmem:[#allocation2 + $0x130] sm:$0xff] %vm730_vm2, %v687_v53  ;;  %v1047_v53 = vld [vmem:[%s2887_s26 + $0x12d] sm:$0xff] }
 0x15c   : > { %981 = vst.msk [vmem:[#allocation2 + $0x48] sm:$0xff] %vm971_vm3, %v870_v56  ;;  %v1049_v56 = vld [vmem:[%s2887_s26 + $0x13d] sm:$0xff] }
 0x15f   : > { %1100 = vrot.lane.b32.xlu1 %v1016_v54, %s2822_s30  ;;  %1098 = vrot.lane.b32.xlu0 %v1015_v55, %s2822_s30 }
 0x160   : > { %1102 = vrot.lane.b32.xlu2 %v1017_v57, %s2822_s30  ;;  %v1048_v57 = vld [vmem:[%s2887_s26 + $0x135] sm:$0xff] }
 0x161   : > { %v856_v58 = vpop.permute.xlu1 %855  ;;  %v854_v59 = vpop.permute.xlu0 %853 }
 0x162   : > { %974 = vst.msk [vmem:[#allocation2 + $0x10] sm:$0xff] %vm971_vm3, %v856_v58  ;;  %v876_v62 = vpop.permute.xlu2 %875 }
 0x163   : > { %973 = vst.msk [vmem:[#allocation2 + $0x8] sm:$0xff] %vm971_vm3, %v854_v59  ;;  %v1050_v59 = vld [vmem:[%s2887_s26 + $0x145] sm:$0xff] }
 0x164   : > { %984 = vst.msk [vmem:[#allocation2 + $0x60] sm:$0xff] %vm971_vm3, %v876_v62  ;;  %v1253_v62 = vld [vmem:[%s2887_s26 + $0x16] sm:$0xff] }
 0x167   : > { %1106 = vrot.lane.b32.xlu1 %v1019_v60, %s2822_s30  ;;  %1104 = vrot.lane.b32.xlu0 %v1018_v61, %s2822_s30 }
 0x168   : > { %1108 = vrot.lane.b32.xlu2 %v1020_v63, %s2822_s30  ;;  %v1051_v63 = vld [vmem:[%s2887_s26 + $0x14d] sm:$0xff] }
 0x169   : > { %v862_v0 = vpop.permute.xlu1 %861  ;;  %v860_v1 = vpop.permute.xlu0 %859 }
 0x16a   : > { %977 = vst.msk [vmem:[#allocation2 + $0x28] sm:$0xff] %vm971_vm3, %v862_v0  ;;  %v882_v4 = vpop.permute.xlu2 %881 }
 0x16b   : > { %976 = vst.msk [vmem:[#allocation2 + $0x20] sm:$0xff] %vm971_vm3, %v860_v1  ;;  %v1254_v1 = vld [vmem:[%s2887_s26 + $0x1e] sm:$0xff] }
 0x16c   : > { %987 = vst.msk [vmem:[#allocation2 + $0x78] sm:$0xff] %vm971_vm3, %v882_v4  ;;  %v1256_v4 = vld [vmem:[%s2887_s26 + $0x2e] sm:$0xff] }
 0x16f   : > { %1112 = vrot.lane.b32.xlu1 %v1022_v2, %s2822_s30  ;;  %1110 = vrot.lane.b32.xlu0 %v1021_v3, %s2822_s30 }
 0x170   : > { %1114 = vrot.lane.b32.xlu2 %v1023_v5, %s2822_s30  ;;  %v1255_v5 = vld [vmem:[%s2887_s26 + $0x26] sm:$0xff] }
 0x171   : > { %v868_v6 = vpop.permute.xlu1 %867  ;;  %v866_v7 = vpop.permute.xlu0 %865 }
 0x172   : > { %980 = vst.msk [vmem:[#allocation2 + $0x40] sm:$0xff] %vm971_vm3, %v868_v6  ;;  %v888_v10 = vpop.permute.xlu2 %887 }
 0x173   : > { %979 = vst.msk [vmem:[#allocation2 + $0x38] sm:$0xff] %vm971_vm3, %v866_v7  ;;  %v1257_v7 = vld [vmem:[%s2887_s26 + $0x36] sm:$0xff] }
 0x174   : > { %990 = vst.msk [vmem:[#allocation2 + $0x90] sm:$0xff] %vm971_vm3, %v888_v10  ;;  %v1259_v10 = vld [vmem:[%s2887_s26 + $0x46] sm:$0xff] }
 0x177   : > { %1118 = vrot.lane.b32.xlu1 %v1025_v8, %s2822_s30  ;;  %1116 = vrot.lane.b32.xlu0 %v1024_v9, %s2822_s30 }
 0x178   : > { %1120 = vrot.lane.b32.xlu2 %v1026_v11, %s2822_s30  ;;  %v1258_v11 = vld [vmem:[%s2887_s26 + $0x3e] sm:$0xff] }
 0x179   : > { %v874_v12 = vpop.permute.xlu1 %873  ;;  %v872_v13 = vpop.permute.xlu0 %871 }
 0x17a   : > { %983 = vst.msk [vmem:[#allocation2 + $0x58] sm:$0xff] %vm971_vm3, %v874_v12  ;;  %v894_v16 = vpop.permute.xlu2 %893 }
 0x17b   : > { %982 = vst.msk [vmem:[#allocation2 + $0x50] sm:$0xff] %vm971_vm3, %v872_v13  ;;  %v1260_v13 = vld [vmem:[%s2887_s26 + $0x4e] sm:$0xff] }
 0x17c   : > { %993 = vst.msk [vmem:[#allocation2 + $0xa8] sm:$0xff] %vm971_vm3, %v894_v16  ;;  %v1262_v16 = vld [vmem:[%s2887_s26 + $0x5e] sm:$0xff] }
 0x17f   : > { %1124 = vrot.lane.b32.xlu1 %v1028_v14, %s2822_s30  ;;  %1122 = vrot.lane.b32.xlu0 %v1027_v15, %s2822_s30 }
 0x180   : > { %1126 = vrot.lane.b32.xlu2 %v1029_v17, %s2822_s30  ;;  %v1261_v17 = vld [vmem:[%s2887_s26 + $0x56] sm:$0xff] }
 0x181   : > { %v880_v18 = vpop.permute.xlu1 %879  ;;  %v878_v19 = vpop.permute.xlu0 %877 }
 0x182   : > { %986 = vst.msk [vmem:[#allocation2 + $0x70] sm:$0xff] %vm971_vm3, %v880_v18  ;;  %v900_v22 = vpop.permute.xlu2 %899 }
 0x183   : > { %985 = vst.msk [vmem:[#allocation2 + $0x68] sm:$0xff] %vm971_vm3, %v878_v19  ;;  %v1263_v19 = vld [vmem:[%s2887_s26 + $0x66] sm:$0xff] }
 0x184   : > { %996 = vst.msk [vmem:[#allocation2 + $0xc0] sm:$0xff] %vm971_vm3, %v900_v22  ;;  %v1265_v22 = vld [vmem:[%s2887_s26 + $0x76] sm:$0xff] }
 0x187   : > { %1130 = vrot.lane.b32.xlu1 %v1031_v20, %s2822_s30  ;;  %1128 = vrot.lane.b32.xlu0 %v1030_v21, %s2822_s30 }
 0x188   : > { %1132 = vrot.lane.b32.xlu2 %v1032_v23, %s2822_s30  ;;  %v1264_v23 = vld [vmem:[%s2887_s26 + $0x6e] sm:$0xff] }
 0x189   : > { %v886_v24 = vpop.permute.xlu1 %885  ;;  %v884_v25 = vpop.permute.xlu0 %883 }
 0x18a   : > { %989 = vst.msk [vmem:[#allocation2 + $0x88] sm:$0xff] %vm971_vm3, %v886_v24  ;;  %v906_v28 = vpop.permute.xlu2 %905 }
 0x18b   : > { %988 = vst.msk [vmem:[#allocation2 + $0x80] sm:$0xff] %vm971_vm3, %v884_v25  ;;  %v1266_v25 = vld [vmem:[%s2887_s26 + $0x7e] sm:$0xff] }
 0x18c   : > { %999 = vst.msk [vmem:[#allocation2 + $0xd8] sm:$0xff] %vm971_vm3, %v906_v28  ;;  %v1268_v28 = vld [vmem:[%s2887_s26 + $0x8e] sm:$0xff] }
 0x18f   : > { %1136 = vrot.lane.b32.xlu1 %v1034_v26, %s2822_s30  ;;  %1134 = vrot.lane.b32.xlu0 %v1033_v27, %s2822_s30 }
 0x190   : > { %1138 = vrot.lane.b32.xlu2 %v1035_v29, %s2822_s30  ;;  %v1267_v29 = vld [vmem:[%s2887_s26 + $0x86] sm:$0xff] }
 0x191   : > { %v892_v30 = vpop.permute.xlu1 %891  ;;  %v890_v31 = vpop.permute.xlu0 %889 }
 0x192   : > { %992 = vst.msk [vmem:[#allocation2 + $0xa0] sm:$0xff] %vm971_vm3, %v892_v30  ;;  %v912_v34 = vpop.permute.xlu2 %911 }
 0x193   : > { %991 = vst.msk [vmem:[#allocation2 + $0x98] sm:$0xff] %vm971_vm3, %v890_v31  ;;  %v1269_v31 = vld [vmem:[%s2887_s26 + $0x96] sm:$0xff] }
 0x194   : > { %1002 = vst.msk [vmem:[#allocation2 + $0xf0] sm:$0xff] %vm971_vm3, %v912_v34  ;;  %v1271_v34 = vld [vmem:[%s2887_s26 + $0xa6] sm:$0xff] }
 0x197   : > { %1142 = vrot.lane.b32.xlu1 %v1037_v32, %s2822_s30  ;;  %1140 = vrot.lane.b32.xlu0 %v1036_v33, %s2822_s30 }
 0x198   : > { %1144 = vrot.lane.b32.xlu2 %v1038_v35, %s2822_s30  ;;  %v1270_v35 = vld [vmem:[%s2887_s26 + $0x9e] sm:$0xff] }
 0x199   : > { %v898_v36 = vpop.permute.xlu1 %897  ;;  %v896_v37 = vpop.permute.xlu0 %895 }
 0x19a   : > { %995 = vst.msk [vmem:[#allocation2 + $0xb8] sm:$0xff] %vm971_vm3, %v898_v36  ;;  %v918_v40 = vpop.permute.xlu2 %917 }
 0x19b   : > { %994 = vst.msk [vmem:[#allocation2 + $0xb0] sm:$0xff] %vm971_vm3, %v896_v37  ;;  %v1272_v37 = vld [vmem:[%s2887_s26 + $0xae] sm:$0xff] }
 0x19c   : > { %1005 = vst.msk [vmem:[#allocation2 + $0x108] sm:$0xff] %vm971_vm3, %v918_v40  ;;  %v1274_v40 = vld [vmem:[%s2887_s26 + $0xbe] sm:$0xff] }
 0x19f   : > { %1148 = vrot.lane.b32.xlu1 %v1040_v38, %s2822_s30  ;;  %1146 = vrot.lane.b32.xlu0 %v1039_v39, %s2822_s30 }
 0x1a0   : > { %1150 = vrot.lane.b32.xlu2 %v1041_v41, %s2822_s30  ;;  %v1273_v41 = vld [vmem:[%s2887_s26 + $0xb6] sm:$0xff] }
 0x1a1   : > { %v904_v42 = vpop.permute.xlu1 %903  ;;  %v902_v43 = vpop.permute.xlu0 %901 }
 0x1a2   : > { %998 = vst.msk [vmem:[#allocation2 + $0xd0] sm:$0xff] %vm971_vm3, %v904_v42  ;;  %v924_v46 = vpop.permute.xlu2 %923 }
 0x1a3   : > { %997 = vst.msk [vmem:[#allocation2 + $0xc8] sm:$0xff] %vm971_vm3, %v902_v43  ;;  %v1275_v43 = vld [vmem:[%s2887_s26 + $0xc6] sm:$0xff] }
 0x1a4   : > { %1008 = vst.msk [vmem:[#allocation2 + $0x120] sm:$0xff] %vm971_vm3, %v924_v46  ;;  %v1277_v46 = vld [vmem:[%s2887_s26 + $0xd6] sm:$0xff] }
 0x1a7   : > { %1154 = vrot.lane.b32.xlu1 %v1043_v44, %s2822_s30  ;;  %1152 = vrot.lane.b32.xlu0 %v1042_v45, %s2822_s30 }
 0x1a8   : > { %1156 = vrot.lane.b32.xlu2 %v1044_v47, %s2822_s30  ;;  %v1276_v47 = vld [vmem:[%s2887_s26 + $0xce] sm:$0xff] }
 0x1a9   : > { %v910_v48 = vpop.permute.xlu1 %909  ;;  %v908_v49 = vpop.permute.xlu0 %907 }
 0x1aa   : > { %1001 = vst.msk [vmem:[#allocation2 + $0xe8] sm:$0xff] %vm971_vm3, %v910_v48  ;;  %v930_v52 = vpop.permute.xlu2 %929 }
 0x1ab   : > { %1000 = vst.msk [vmem:[#allocation2 + $0xe0] sm:$0xff] %vm971_vm3, %v908_v49  ;;  %v1278_v49 = vld [vmem:[%s2887_s26 + $0xde] sm:$0xff] }
 0x1ac   : > { %1011 = vst.msk [vmem:[#allocation2 + $0x138] sm:$0xff] %vm971_vm3, %v930_v52  ;;  %v1280_v52 = vld [vmem:[%s2887_s26 + $0xee] sm:$0xff] }
 0x1af   : > { %1160 = vrot.lane.b32.xlu1 %v1046_v50, %s2822_s30  ;;  %1158 = vrot.lane.b32.xlu0 %v1045_v51, %s2822_s30 }
 0x1b0   : > { %1162 = vrot.lane.b32.xlu2 %v1047_v53, %s2822_s30  ;;  %v1279_v53 = vld [vmem:[%s2887_s26 + $0xe6] sm:$0xff] }
 0x1b1   : > { %v916_v54 = vpop.permute.xlu1 %915  ;;  %v914_v55 = vpop.permute.xlu0 %913 }
 0x1b2   : > { %1004 = vst.msk [vmem:[#allocation2 + $0x100] sm:$0xff] %vm971_vm3, %v916_v54  ;;  %v1097_v58 = vpop.permute.xlu2 %1096 }
 0x1b3   : > { %1003 = vst.msk [vmem:[#allocation2 + $0xf8] sm:$0xff] %vm971_vm3, %v914_v55  ;;  %v1281_v55 = vld [vmem:[%s2887_s26 + $0xf6] sm:$0xff] }
 0x1b4   : > { %1215 = vst.msk [vmem:[#allocation2 + $0x10] sm:$0xff] %vm1212_vm4, %v1097_v58  ;;  %v1283_v58 = vld [vmem:[%s2887_s26 + $0x106] sm:$0xff] }
 0x1b7   : > { %1166 = vrot.lane.b32.xlu1 %v1049_v56, %s2822_s30  ;;  %1164 = vrot.lane.b32.xlu0 %v1048_v57, %s2822_s30 }
 0x1b8   : > { %1168 = vrot.lane.b32.xlu2 %v1050_v59, %s2822_s30  ;;  %v1282_v59 = vld [vmem:[%s2887_s26 + $0xfe] sm:$0xff] }
 0x1b9   : > { %v922_v60 = vpop.permute.xlu1 %921  ;;  %v920_v61 = vpop.permute.xlu0 %919 }
 0x1ba   : > { %1007 = vst.msk [vmem:[#allocation2 + $0x118] sm:$0xff] %vm971_vm3, %v922_v60  ;;  %v1103_v0 = vpop.permute.xlu2 %1102 }
 0x1bb   : > { %1006 = vst.msk [vmem:[#allocation2 + $0x110] sm:$0xff] %vm971_vm3, %v920_v61  ;;  %v1284_v61 = vld [vmem:[%s2887_s26 + $0x10e] sm:$0xff] }
 0x1bc   : > { %1218 = vst.msk [vmem:[#allocation2 + $0x28] sm:$0xff] %vm1212_vm4, %v1103_v0  ;;  %v1286_v0 = vld [vmem:[%s2887_s26 + $0x11e] sm:$0xff] }
 0x1bf   : > { %1333 = vrot.lane.b32.xlu1 %v1253_v62, %s2823_s4  ;;  %1170 = vrot.lane.b32.xlu0 %v1051_v63, %s2822_s30 }
 0x1c0   : > { %1335 = vrot.lane.b32.xlu2 %v1254_v1, %s2823_s4  ;;  %v1285_v1 = vld [vmem:[%s2887_s26 + $0x116] sm:$0xff] }
 0x1c1   : > { %v928_v2 = vpop.permute.xlu1 %927  ;;  %v926_v3 = vpop.permute.xlu0 %925 }
 0x1c2   : > { %1010 = vst.msk [vmem:[#allocation2 + $0x130] sm:$0xff] %vm971_vm3, %v928_v2  ;;  %v1109_v6 = vpop.permute.xlu2 %1108 }
 0x1c3   : > { %1009 = vst.msk [vmem:[#allocation2 + $0x128] sm:$0xff] %vm971_vm3, %v926_v3  ;;  %v1287_v3 = vld [vmem:[%s2887_s26 + $0x126] sm:$0xff] }
 0x1c4   : > { %1221 = vst.msk [vmem:[#allocation2 + $0x40] sm:$0xff] %vm1212_vm4, %v1109_v6  ;;  %v1289_v6 = vld [vmem:[%s2887_s26 + $0x136] sm:$0xff] }
 0x1c7   : > { %1339 = vrot.lane.b32.xlu1 %v1256_v4, %s2823_s4  ;;  %1337 = vrot.lane.b32.xlu0 %v1255_v5, %s2823_s4 }
 0x1c8   : > { %1341 = vrot.lane.b32.xlu2 %v1257_v7, %s2823_s4  ;;  %v1288_v7 = vld [vmem:[%s2887_s26 + $0x12e] sm:$0xff] }
 0x1c9   : > { %v1095_v8 = vpop.permute.xlu1 %1094  ;;  %v1093_v9 = vpop.permute.xlu0 %1092 }
 0x1ca   : > { %1214 = vst.msk [vmem:[#allocation2 + $0x8] sm:$0xff] %vm1212_vm4, %v1095_v8  ;;  %v1115_v12 = vpop.permute.xlu2 %1114 }
 0x1cb   : > { %1213 = vst.msk [vmem:[#allocation2] sm:$0xff] %vm1212_vm4, %v1093_v9  ;;  %v1290_v9 = vld [vmem:[%s2887_s26 + $0x13e] sm:$0xff] }
 0x1cc   : > { %1224 = vst.msk [vmem:[#allocation2 + $0x58] sm:$0xff] %vm1212_vm4, %v1115_v12  ;;  %v1292_v12 = vld [vmem:[%s2887_s26 + $0x14e] sm:$0xff] }
 0x1cf   : > { %1345 = vrot.lane.b32.xlu1 %v1259_v10, %s2823_s4  ;;  %1343 = vrot.lane.b32.xlu0 %v1258_v11, %s2823_s4 }
 0x1d0   : > { %1347 = vrot.lane.b32.xlu2 %v1260_v13, %s2823_s4  ;;  %v1291_v13 = vld [vmem:[%s2887_s26 + $0x146] sm:$0xff] }
 0x1d1   : > { %v1101_v14 = vpop.permute.xlu1 %1100  ;;  %v1099_v15 = vpop.permute.xlu0 %1098 }
 0x1d2   : > { %1217 = vst.msk [vmem:[#allocation2 + $0x20] sm:$0xff] %vm1212_vm4, %v1101_v14  ;;  %v1121_v18 = vpop.permute.xlu2 %1120 }
 0x1d3   : > { %1216 = vst.msk [vmem:[#allocation2 + $0x18] sm:$0xff] %vm1212_vm4, %v1099_v15  ;;  %v1494_v15 = vld [vmem:[%s2887_s26 + $0x28] sm:$0xff] }
 0x1d4   : > { %1227 = vst.msk [vmem:[#allocation2 + $0x70] sm:$0xff] %vm1212_vm4, %v1121_v18  ;;  %v1496_v18 = vld [vmem:[%s2887_s26 + $0x38] sm:$0xff] }
 0x1d7   : > { %1351 = vrot.lane.b32.xlu1 %v1262_v16, %s2823_s4  ;;  %1349 = vrot.lane.b32.xlu0 %v1261_v17, %s2823_s4 }
 0x1d8   : > { %1353 = vrot.lane.b32.xlu2 %v1263_v19, %s2823_s4  ;;  %v1495_v19 = vld [vmem:[%s2887_s26 + $0x30] sm:$0xff] }
 0x1d9   : > { %v1107_v20 = vpop.permute.xlu1 %1106  ;;  %v1105_v21 = vpop.permute.xlu0 %1104 }
 0x1da   : > { %1220 = vst.msk [vmem:[#allocation2 + $0x38] sm:$0xff] %vm1212_vm4, %v1107_v20  ;;  %v1127_v24 = vpop.permute.xlu2 %1126 }
 0x1db   : > { %1219 = vst.msk [vmem:[#allocation2 + $0x30] sm:$0xff] %vm1212_vm4, %v1105_v21  ;;  %v1497_v21 = vld [vmem:[%s2887_s26 + $0x40] sm:$0xff] }
 0x1dc   : > { %1230 = vst.msk [vmem:[#allocation2 + $0x88] sm:$0xff] %vm1212_vm4, %v1127_v24  ;;  %v1499_v24 = vld [vmem:[%s2887_s26 + $0x50] sm:$0xff] }
 0x1df   : > { %1357 = vrot.lane.b32.xlu1 %v1265_v22, %s2823_s4  ;;  %1355 = vrot.lane.b32.xlu0 %v1264_v23, %s2823_s4 }
 0x1e0   : > { %1359 = vrot.lane.b32.xlu2 %v1266_v25, %s2823_s4  ;;  %v1498_v25 = vld [vmem:[%s2887_s26 + $0x48] sm:$0xff] }
 0x1e1   : > { %v1113_v26 = vpop.permute.xlu1 %1112  ;;  %v1111_v27 = vpop.permute.xlu0 %1110 }
 0x1e2   : > { %1223 = vst.msk [vmem:[#allocation2 + $0x50] sm:$0xff] %vm1212_vm4, %v1113_v26  ;;  %v1133_v30 = vpop.permute.xlu2 %1132 }
 0x1e3   : > { %1222 = vst.msk [vmem:[#allocation2 + $0x48] sm:$0xff] %vm1212_vm4, %v1111_v27  ;;  %v1500_v27 = vld [vmem:[%s2887_s26 + $0x58] sm:$0xff] }
 0x1e4   : > { %1233 = vst.msk [vmem:[#allocation2 + $0xa0] sm:$0xff] %vm1212_vm4, %v1133_v30  ;;  %v1502_v30 = vld [vmem:[%s2887_s26 + $0x68] sm:$0xff] }
 0x1e7   : > { %1363 = vrot.lane.b32.xlu1 %v1268_v28, %s2823_s4  ;;  %1361 = vrot.lane.b32.xlu0 %v1267_v29, %s2823_s4 }
 0x1e8   : > { %1365 = vrot.lane.b32.xlu2 %v1269_v31, %s2823_s4  ;;  %v1501_v31 = vld [vmem:[%s2887_s26 + $0x60] sm:$0xff] }
 0x1e9   : > { %v1119_v32 = vpop.permute.xlu1 %1118  ;;  %v1117_v33 = vpop.permute.xlu0 %1116 }
 0x1ea   : > { %1226 = vst.msk [vmem:[#allocation2 + $0x68] sm:$0xff] %vm1212_vm4, %v1119_v32  ;;  %v1139_v36 = vpop.permute.xlu2 %1138 }
 0x1eb   : > { %1225 = vst.msk [vmem:[#allocation2 + $0x60] sm:$0xff] %vm1212_vm4, %v1117_v33  ;;  %v1503_v33 = vld [vmem:[%s2887_s26 + $0x70] sm:$0xff] }
 0x1ec   : > { %1236 = vst.msk [vmem:[#allocation2 + $0xb8] sm:$0xff] %vm1212_vm4, %v1139_v36  ;;  %v1505_v36 = vld [vmem:[%s2887_s26 + $0x80] sm:$0xff] }
 0x1ef   : > { %1369 = vrot.lane.b32.xlu1 %v1271_v34, %s2823_s4  ;;  %1367 = vrot.lane.b32.xlu0 %v1270_v35, %s2823_s4 }
 0x1f0   : > { %1371 = vrot.lane.b32.xlu2 %v1272_v37, %s2823_s4  ;;  %v1504_v37 = vld [vmem:[%s2887_s26 + $0x78] sm:$0xff] }
 0x1f1   : > { %v1125_v38 = vpop.permute.xlu1 %1124  ;;  %v1123_v39 = vpop.permute.xlu0 %1122 }
 0x1f2   : > { %1229 = vst.msk [vmem:[#allocation2 + $0x80] sm:$0xff] %vm1212_vm4, %v1125_v38  ;;  %v1145_v42 = vpop.permute.xlu2 %1144 }
 0x1f3   : > { %1228 = vst.msk [vmem:[#allocation2 + $0x78] sm:$0xff] %vm1212_vm4, %v1123_v39  ;;  %v1506_v39 = vld [vmem:[%s2887_s26 + $0x88] sm:$0xff] }
 0x1f4   : > { %1239 = vst.msk [vmem:[#allocation2 + $0xd0] sm:$0xff] %vm1212_vm4, %v1145_v42  ;;  %v1508_v42 = vld [vmem:[%s2887_s26 + $0x98] sm:$0xff] }
 0x1f7   : > { %1375 = vrot.lane.b32.xlu1 %v1274_v40, %s2823_s4  ;;  %1373 = vrot.lane.b32.xlu0 %v1273_v41, %s2823_s4 }
 0x1f8   : > { %1377 = vrot.lane.b32.xlu2 %v1275_v43, %s2823_s4  ;;  %v1507_v43 = vld [vmem:[%s2887_s26 + $0x90] sm:$0xff] }
 0x1f9   : > { %v1131_v44 = vpop.permute.xlu1 %1130  ;;  %v1129_v45 = vpop.permute.xlu0 %1128 }
 0x1fa   : > { %1232 = vst.msk [vmem:[#allocation2 + $0x98] sm:$0xff] %vm1212_vm4, %v1131_v44  ;;  %v1151_v48 = vpop.permute.xlu2 %1150 }
 0x1fb   : > { %1231 = vst.msk [vmem:[#allocation2 + $0x90] sm:$0xff] %vm1212_vm4, %v1129_v45  ;;  %v1509_v45 = vld [vmem:[%s2887_s26 + $0xa0] sm:$0xff] }
 0x1fc   : > { %1242 = vst.msk [vmem:[#allocation2 + $0xe8] sm:$0xff] %vm1212_vm4, %v1151_v48  ;;  %v1511_v48 = vld [vmem:[%s2887_s26 + $0xb0] sm:$0xff] }
 0x1ff   : > { %1381 = vrot.lane.b32.xlu1 %v1277_v46, %s2823_s4  ;;  %1379 = vrot.lane.b32.xlu0 %v1276_v47, %s2823_s4 }
 0x200   : > { %1383 = vrot.lane.b32.xlu2 %v1278_v49, %s2823_s4  ;;  %v1510_v49 = vld [vmem:[%s2887_s26 + $0xa8] sm:$0xff] }
 0x201   : > { %v1137_v50 = vpop.permute.xlu1 %1136  ;;  %v1135_v51 = vpop.permute.xlu0 %1134 }
 0x202   : > { %1235 = vst.msk [vmem:[#allocation2 + $0xb0] sm:$0xff] %vm1212_vm4, %v1137_v50  ;;  %v1157_v54 = vpop.permute.xlu2 %1156 }
 0x203   : > { %1234 = vst.msk [vmem:[#allocation2 + $0xa8] sm:$0xff] %vm1212_vm4, %v1135_v51  ;;  %v1512_v51 = vld [vmem:[%s2887_s26 + $0xb8] sm:$0xff] }
 0x204   : > { %1245 = vst.msk [vmem:[#allocation2 + $0x100] sm:$0xff] %vm1212_vm4, %v1157_v54  ;;  %v1514_v54 = vld [vmem:[%s2887_s26 + $0xc8] sm:$0xff] }
 0x207   : > { %1387 = vrot.lane.b32.xlu1 %v1280_v52, %s2823_s4  ;;  %1385 = vrot.lane.b32.xlu0 %v1279_v53, %s2823_s4 }
 0x208   : > { %1389 = vrot.lane.b32.xlu2 %v1281_v55, %s2823_s4  ;;  %v1513_v55 = vld [vmem:[%s2887_s26 + $0xc0] sm:$0xff] }
 0x209   : > { %v1143_v56 = vpop.permute.xlu1 %1142  ;;  %v1141_v57 = vpop.permute.xlu0 %1140 }
 0x20a   : > { %1238 = vst.msk [vmem:[#allocation2 + $0xc8] sm:$0xff] %vm1212_vm4, %v1143_v56  ;;  %v1163_v60 = vpop.permute.xlu2 %1162 }
 0x20b   : > { %1237 = vst.msk [vmem:[#allocation2 + $0xc0] sm:$0xff] %vm1212_vm4, %v1141_v57  ;;  %v1515_v57 = vld [vmem:[%s2887_s26 + $0xd0] sm:$0xff] }
 0x20c   : > { %1248 = vst.msk [vmem:[#allocation2 + $0x118] sm:$0xff] %vm1212_vm4, %v1163_v60  ;;  %v1517_v60 = vld [vmem:[%s2887_s26 + $0xe0] sm:$0xff] }
 0x20f   : > { %1393 = vrot.lane.b32.xlu1 %v1283_v58, %s2823_s4  ;;  %1391 = vrot.lane.b32.xlu0 %v1282_v59, %s2823_s4 }
 0x210   : > { %1395 = vrot.lane.b32.xlu2 %v1284_v61, %s2823_s4  ;;  %v1516_v61 = vld [vmem:[%s2887_s26 + $0xd8] sm:$0xff] }
 0x211   : > { %v1149_v62 = vpop.permute.xlu1 %1148  ;;  %v1147_v63 = vpop.permute.xlu0 %1146 }
 0x212   : > { %1241 = vst.msk [vmem:[#allocation2 + $0xe0] sm:$0xff] %vm1212_vm4, %v1149_v62  ;;  %v1169_v2 = vpop.permute.xlu2 %1168 }
 0x213   : > { %1240 = vst.msk [vmem:[#allocation2 + $0xd8] sm:$0xff] %vm1212_vm4, %v1147_v63  ;;  %v1518_v63 = vld [vmem:[%s2887_s26 + $0xe8] sm:$0xff] }
 0x214   : > { %1251 = vst.msk [vmem:[#allocation2 + $0x130] sm:$0xff] %vm1212_vm4, %v1169_v2  ;;  %v1520_v2 = vld [vmem:[%s2887_s26 + $0xf8] sm:$0xff] }
 0x217   : > { %1399 = vrot.lane.b32.xlu1 %v1286_v0, %s2823_s4  ;;  %1397 = vrot.lane.b32.xlu0 %v1285_v1, %s2823_s4 }
 0x218   : > { %1401 = vrot.lane.b32.xlu2 %v1287_v3, %s2823_s4  ;;  %v1519_v3 = vld [vmem:[%s2887_s26 + $0xf0] sm:$0xff] }
 0x219   : > { %v1155_v4 = vpop.permute.xlu1 %1154  ;;  %v1153_v5 = vpop.permute.xlu0 %1152 }
 0x21a   : > { %1244 = vst.msk [vmem:[#allocation2 + $0xf8] sm:$0xff] %vm1212_vm4, %v1155_v4  ;;  %v1336_v8 = vpop.permute.xlu2 %1335 }
 0x21b   : > { %1243 = vst.msk [vmem:[#allocation2 + $0xf0] sm:$0xff] %vm1212_vm4, %v1153_v5  ;;  %v1521_v5 = vld [vmem:[%s2887_s26 + $0x100] sm:$0xff] }
 0x21c   : > { %1455 = vst.msk [vmem:[#allocation2 + $0x8] sm:$0xff] %vm1453_vm5, %v1336_v8  ;;  %v1523_v8 = vld [vmem:[%s2887_s26 + $0x110] sm:$0xff] }
 0x21f   : > { %1405 = vrot.lane.b32.xlu1 %v1289_v6, %s2823_s4  ;;  %1403 = vrot.lane.b32.xlu0 %v1288_v7, %s2823_s4 }
 0x220   : > { %1407 = vrot.lane.b32.xlu2 %v1290_v9, %s2823_s4  ;;  %v1522_v9 = vld [vmem:[%s2887_s26 + $0x108] sm:$0xff] }
 0x221   : > { %v1161_v10 = vpop.permute.xlu1 %1160  ;;  %v1159_v11 = vpop.permute.xlu0 %1158 }
 0x222   : > { %1247 = vst.msk [vmem:[#allocation2 + $0x110] sm:$0xff] %vm1212_vm4, %v1161_v10  ;;  %v1342_v14 = vpop.permute.xlu2 %1341 }
 0x223   : > { %1246 = vst.msk [vmem:[#allocation2 + $0x108] sm:$0xff] %vm1212_vm4, %v1159_v11  ;;  %v1524_v11 = vld [vmem:[%s2887_s26 + $0x118] sm:$0xff] }
 0x224   : > { %1458 = vst.msk [vmem:[#allocation2 + $0x20] sm:$0xff] %vm1453_vm5, %v1342_v14  ;;  %v1526_v14 = vld [vmem:[%s2887_s26 + $0x128] sm:$0xff] }
 0x227   : > { %1411 = vrot.lane.b32.xlu1 %v1292_v12, %s2823_s4  ;;  %1409 = vrot.lane.b32.xlu0 %v1291_v13, %s2823_s4 }
 0x228   : > { %1574 = vrot.lane.b32.xlu2 %v1494_v15, %s2824_s5  ;;  %v1525_v15 = vld [vmem:[%s2887_s26 + $0x120] sm:$0xff] }
 0x229   : > { %v1167_v16 = vpop.permute.xlu1 %1166  ;;  %v1165_v17 = vpop.permute.xlu0 %1164 }
 0x22a   : > { %1250 = vst.msk [vmem:[#allocation2 + $0x128] sm:$0xff] %vm1212_vm4, %v1167_v16  ;;  %v1348_v20 = vpop.permute.xlu2 %1347 }
 0x22b   : > { %1249 = vst.msk [vmem:[#allocation2 + $0x120] sm:$0xff] %vm1212_vm4, %v1165_v17  ;;  %v1527_v17 = vld [vmem:[%s2887_s26 + $0x130] sm:$0xff] }
 0x22c   : > { %1461 = vst.msk [vmem:[#allocation2 + $0x38] sm:$0xff] %vm1453_vm5, %v1348_v20  ;;  %v1529_v20 = vld [vmem:[%s2887_s26 + $0x140] sm:$0xff] }
 0x22f   : > { %1578 = vrot.lane.b32.xlu1 %v1496_v18, %s2824_s5  ;;  %1576 = vrot.lane.b32.xlu0 %v1495_v19, %s2824_s5 }
 0x230   : > { %1580 = vrot.lane.b32.xlu2 %v1497_v21, %s2824_s5  ;;  %v1528_v21 = vld [vmem:[%s2887_s26 + $0x138] sm:$0xff] }
 0x231   : > { %v1334_v22 = vpop.permute.xlu1 %1333  ;;  %v1171_v23 = vpop.permute.xlu0 %1170 }
 0x232   : > { %1454 = vst.msk [vmem:[#allocation2] sm:$0xff] %vm1453_vm5, %v1334_v22  ;;  %v1354_v26 = vpop.permute.xlu2 %1353 }
 0x233   : > { %1252 = vst.msk [vmem:[#allocation2 + $0x138] sm:$0xff] %vm1212_vm4, %v1171_v23  ;;  %v1755_v23 = vld [vmem:[%s2887_s26 + $0xc9] sm:$0xff] }
 0x234   : > { %1464 = vst.msk [vmem:[#allocation2 + $0x50] sm:$0xff] %vm1453_vm5, %v1354_v26  ;;  %v1996_v26 = vld [vmem:[%s2887_s26 + $0xca] sm:$0xff] }
 0x237   : > { %1584 = vrot.lane.b32.xlu1 %v1499_v24, %s2824_s5  ;;  %1582 = vrot.lane.b32.xlu0 %v1498_v25, %s2824_s5 }
 0x238   : > { %1586 = vrot.lane.b32.xlu2 %v1500_v27, %s2824_s5  ;;  %v1765_v27 = vld [vmem:[%s2887_s26 + $0x119] sm:$0xff] }
 0x239   : > { %v1340_v28 = vpop.permute.xlu1 %1339  ;;  %v1338_v29 = vpop.permute.xlu0 %1337 }
 0x23a   : > { %1457 = vst.msk [vmem:[#allocation2 + $0x18] sm:$0xff] %vm1453_vm5, %v1340_v28  ;;  %v1360_v32 = vpop.permute.xlu2 %1359 }
 0x23b   : > { %1456 = vst.msk [vmem:[#allocation2 + $0x10] sm:$0xff] %vm1453_vm5, %v1338_v29  ;;  %v2006_v29 = vld [vmem:[%s2887_s26 + $0x11a] sm:$0xff] }
 0x23c   : > { %1467 = vst.msk [vmem:[#allocation2 + $0x68] sm:$0xff] %vm1453_vm5, %v1360_v32  ;;  %v1745_v32 = vld [vmem:[%s2887_s26 + $0x79] sm:$0xff] }
 0x23f   : > { %1590 = vrot.lane.b32.xlu1 %v1502_v30, %s2824_s5  ;;  %1588 = vrot.lane.b32.xlu0 %v1501_v31, %s2824_s5 }
 0x240   : > { %1592 = vrot.lane.b32.xlu2 %v1503_v33, %s2824_s5  ;;  %v1735_v33 = vld [vmem:[%s2887_s26 + $0x29] sm:$0xff] }
 0x241   : > { %v1346_v34 = vpop.permute.xlu1 %1345  ;;  %v1344_v35 = vpop.permute.xlu0 %1343 }
 0x242   : > { %1460 = vst.msk [vmem:[#allocation2 + $0x30] sm:$0xff] %vm1453_vm5, %v1346_v34  ;;  %v1366_v38 = vpop.permute.xlu2 %1365 }
 0x243   : > { %1459 = vst.msk [vmem:[#allocation2 + $0x28] sm:$0xff] %vm1453_vm5, %v1344_v35  ;;  %v1976_v35 = vld [vmem:[%s2887_s26 + $0x2a] sm:$0xff] }
 0x244   : > { %1470 = vst.msk [vmem:[#allocation2 + $0x80] sm:$0xff] %vm1453_vm5, %v1366_v38  ;;  %v1756_v38 = vld [vmem:[%s2887_s26 + $0xd1] sm:$0xff] }
 0x247   : > { %1596 = vrot.lane.b32.xlu1 %v1505_v36, %s2824_s5  ;;  %1594 = vrot.lane.b32.xlu0 %v1504_v37, %s2824_s5 }
 0x248   : > { %1598 = vrot.lane.b32.xlu2 %v1506_v39, %s2824_s5  ;;  %v1986_v39 = vld [vmem:[%s2887_s26 + $0x7a] sm:$0xff] }
 0x249   : > { %v1352_v40 = vpop.permute.xlu1 %1351  ;;  %v1350_v41 = vpop.permute.xlu0 %1349 }
 0x24a   : > { %1463 = vst.msk [vmem:[#allocation2 + $0x48] sm:$0xff] %vm1453_vm5, %v1352_v40  ;;  %v1372_v44 = vpop.permute.xlu2 %1371 }
 0x24b   : > { %1462 = vst.msk [vmem:[#allocation2 + $0x40] sm:$0xff] %vm1453_vm5, %v1350_v41  ;;  %v1766_v41 = vld [vmem:[%s2887_s26 + $0x121] sm:$0xff] }
 0x24c   : > { %1473 = vst.msk [vmem:[#allocation2 + $0x98] sm:$0xff] %vm1453_vm5, %v1372_v44  ;;  %v2007_v44 = vld [vmem:[%s2887_s26 + $0x122] sm:$0xff] }
 0x24f   : > { %1602 = vrot.lane.b32.xlu1 %v1508_v42, %s2824_s5  ;;  %1600 = vrot.lane.b32.xlu0 %v1507_v43, %s2824_s5 }
 0x250   : > { %1604 = vrot.lane.b32.xlu2 %v1509_v45, %s2824_s5  ;;  %v1997_v45 = vld [vmem:[%s2887_s26 + $0xd2] sm:$0xff] }
 0x251   : > { %v1358_v46 = vpop.permute.xlu1 %1357  ;;  %v1356_v47 = vpop.permute.xlu0 %1355 }
 0x252   : > { %1466 = vst.msk [vmem:[#allocation2 + $0x60] sm:$0xff] %vm1453_vm5, %v1358_v46  ;;  %v1378_v50 = vpop.permute.xlu2 %1377 }
 0x253   : > { %1465 = vst.msk [vmem:[#allocation2 + $0x58] sm:$0xff] %vm1453_vm5, %v1356_v47  ;;  %v1736_v47 = vld [vmem:[%s2887_s26 + $0x31] sm:$0xff] }
 0x254   : > { %1476 = vst.msk [vmem:[#allocation2 + $0xb0] sm:$0xff] %vm1453_vm5, %v1378_v50  ;;  %v1977_v50 = vld [vmem:[%s2887_s26 + $0x32] sm:$0xff] }
 0x257   : > { %1608 = vrot.lane.b32.xlu1 %v1511_v48, %s2824_s5  ;;  %1606 = vrot.lane.b32.xlu0 %v1510_v49, %s2824_s5 }
 0x258   : > { %1610 = vrot.lane.b32.xlu2 %v1512_v51, %s2824_s5  ;;  %v1746_v51 = vld [vmem:[%s2887_s26 + $0x81] sm:$0xff] }
 0x259   : > { %v1364_v52 = vpop.permute.xlu1 %1363  ;;  %v1362_v53 = vpop.permute.xlu0 %1361 }
 0x25a   : > { %1469 = vst.msk [vmem:[#allocation2 + $0x78] sm:$0xff] %vm1453_vm5, %v1364_v52  ;;  %v1384_v56 = vpop.permute.xlu2 %1383 }
 0x25b   : > { %1468 = vst.msk [vmem:[#allocation2 + $0x70] sm:$0xff] %vm1453_vm5, %v1362_v53  ;;  %v1987_v53 = vld [vmem:[%s2887_s26 + $0x82] sm:$0xff] }
 0x25c   : > { %1479 = vst.msk [vmem:[#allocation2 + $0xc8] sm:$0xff] %vm1453_vm5, %v1384_v56  ;;  %v1767_v56 = vld [vmem:[%s2887_s26 + $0x129] sm:$0xff] }
 0x25f   : > { %1614 = vrot.lane.b32.xlu1 %v1514_v54, %s2824_s5  ;;  %1612 = vrot.lane.b32.xlu0 %v1513_v55, %s2824_s5 }
 0x260   : > { %1616 = vrot.lane.b32.xlu2 %v1515_v57, %s2824_s5  ;;  %v1757_v57 = vld [vmem:[%s2887_s26 + $0xd9] sm:$0xff] }
 0x261   : > { %v1370_v58 = vpop.permute.xlu1 %1369  ;;  %v1368_v59 = vpop.permute.xlu0 %1367 }
 0x262   : > { %1472 = vst.msk [vmem:[#allocation2 + $0x90] sm:$0xff] %vm1453_vm5, %v1370_v58  ;;  %v1390_v62 = vpop.permute.xlu2 %1389 }
 0x263   : > { %1471 = vst.msk [vmem:[#allocation2 + $0x88] sm:$0xff] %vm1453_vm5, %v1368_v59  ;;  %v1998_v59 = vld [vmem:[%s2887_s26 + $0xda] sm:$0xff] }
 0x264   : > { %1482 = vst.msk [vmem:[#allocation2 + $0xe0] sm:$0xff] %vm1453_vm5, %v1390_v62  ;;  %v1737_v62 = vld [vmem:[%s2887_s26 + $0x39] sm:$0xff] }
 0x267   : > { %1620 = vrot.lane.b32.xlu1 %v1517_v60, %s2824_s5  ;;  %1618 = vrot.lane.b32.xlu0 %v1516_v61, %s2824_s5 }
 0x268   : > { %1622 = vrot.lane.b32.xlu2 %v1518_v63, %s2824_s5  ;;  %v2008_v63 = vld [vmem:[%s2887_s26 + $0x12a] sm:$0xff] }
 0x269   : > { %v1376_v0 = vpop.permute.xlu1 %1375  ;;  %v1374_v1 = vpop.permute.xlu0 %1373 }
 0x26a   : > { %1475 = vst.msk [vmem:[#allocation2 + $0xa8] sm:$0xff] %vm1453_vm5, %v1376_v0  ;;  %v1396_v4 = vpop.permute.xlu2 %1395 }
 0x26b   : > { %1474 = vst.msk [vmem:[#allocation2 + $0xa0] sm:$0xff] %vm1453_vm5, %v1374_v1  ;;  %v1747_v1 = vld [vmem:[%s2887_s26 + $0x89] sm:$0xff] }
 0x26c   : > { %1485 = vst.msk [vmem:[#allocation2 + $0xf8] sm:$0xff] %vm1453_vm5, %v1396_v4  ;;  %v1988_v4 = vld [vmem:[%s2887_s26 + $0x8a] sm:$0xff] }
 0x26f   : > { %1626 = vrot.lane.b32.xlu1 %v1520_v2, %s2824_s5  ;;  %1624 = vrot.lane.b32.xlu0 %v1519_v3, %s2824_s5 }
 0x270   : > { %1628 = vrot.lane.b32.xlu2 %v1521_v5, %s2824_s5  ;;  %v1978_v5 = vld [vmem:[%s2887_s26 + $0x3a] sm:$0xff] }
 0x271   : > { %v1382_v6 = vpop.permute.xlu1 %1381  ;;  %v1380_v7 = vpop.permute.xlu0 %1379 }
 0x272   : > { %1478 = vst.msk [vmem:[#allocation2 + $0xc0] sm:$0xff] %vm1453_vm5, %v1382_v6  ;;  %v1402_v10 = vpop.permute.xlu2 %1401 }
 0x273   : > { %1477 = vst.msk [vmem:[#allocation2 + $0xb8] sm:$0xff] %vm1453_vm5, %v1380_v7  ;;  %v1758_v7 = vld [vmem:[%s2887_s26 + $0xe1] sm:$0xff] }
 0x274   : > { %1488 = vst.msk [vmem:[#allocation2 + $0x110] sm:$0xff] %vm1453_vm5, %v1402_v10  ;;  %v1999_v10 = vld [vmem:[%s2887_s26 + $0xe2] sm:$0xff] }
 0x277   : > { %1632 = vrot.lane.b32.xlu1 %v1523_v8, %s2824_s5  ;;  %1630 = vrot.lane.b32.xlu0 %v1522_v9, %s2824_s5 }
 0x278   : > { %1634 = vrot.lane.b32.xlu2 %v1524_v11, %s2824_s5  ;;  %v1768_v11 = vld [vmem:[%s2887_s26 + $0x131] sm:$0xff] }
 0x279   : > { %v1388_v12 = vpop.permute.xlu1 %1387  ;;  %v1386_v13 = vpop.permute.xlu0 %1385 }
 0x27a   : > { %1481 = vst.msk [vmem:[#allocation2 + $0xd8] sm:$0xff] %vm1453_vm5, %v1388_v12  ;;  %v1408_v16 = vpop.permute.xlu2 %1407 }
 0x27b   : > { %1480 = vst.msk [vmem:[#allocation2 + $0xd0] sm:$0xff] %vm1453_vm5, %v1386_v13  ;;  %v2009_v13 = vld [vmem:[%s2887_s26 + $0x132] sm:$0xff] }
 0x27c   : > { %1491 = vst.msk [vmem:[#allocation2 + $0x128] sm:$0xff] %vm1453_vm5, %v1408_v16  ;;  %v1748_v16 = vld [vmem:[%s2887_s26 + $0x91] sm:$0xff] }
 0x27f   : > { %1638 = vrot.lane.b32.xlu1 %v1526_v14, %s2824_s5  ;;  %1636 = vrot.lane.b32.xlu0 %v1525_v15, %s2824_s5 }
 0x280   : > { %1640 = vrot.lane.b32.xlu2 %v1527_v17, %s2824_s5  ;;  %v1738_v17 = vld [vmem:[%s2887_s26 + $0x41] sm:$0xff] }
 0x281   : > { %v1394_v18 = vpop.permute.xlu1 %1393  ;;  %v1392_v19 = vpop.permute.xlu0 %1391 }
 0x282   : > { %1484 = vst.msk [vmem:[#allocation2 + $0xf0] sm:$0xff] %vm1453_vm5, %v1394_v18  ;;  %v1575_v22 = vpop.permute.xlu2 %1574 }
 0x283   : > { %1483 = vst.msk [vmem:[#allocation2 + $0xe8] sm:$0xff] %vm1453_vm5, %v1392_v19  ;;  %v1979_v19 = vld [vmem:[%s2887_s26 + $0x42] sm:$0xff] }
 0x284   : > { %1695 = vst.msk [vmem:[#allocation2] sm:$0xff] %vm1694_vm6, %v1575_v22  ;;  %v1759_v22 = vld [vmem:[%s2887_s26 + $0xe9] sm:$0xff] }
 0x287   : > { %1644 = vrot.lane.b32.xlu1 %v1529_v20, %s2824_s5  ;;  %1642 = vrot.lane.b32.xlu0 %v1528_v21, %s2824_s5 }
 0x288   : > { %1855 = vrot.lane.b32.xlu2 %v1755_v23, %s2825_s6  ;;  %v1989_v23 = vld [vmem:[%s2887_s26 + $0x92] sm:$0xff] }
 0x289   : > { %v1400_v24 = vpop.permute.xlu1 %1399  ;;  %v1398_v25 = vpop.permute.xlu0 %1397 }
 0x28a   : > { %1487 = vst.msk [vmem:[#allocation2 + $0x108] sm:$0xff] %vm1453_vm5, %v1400_v24  ;;  %v1581_v28 = vpop.permute.xlu2 %1580 }
 0x28b   : > { %1486 = vst.msk [vmem:[#allocation2 + $0x100] sm:$0xff] %vm1453_vm5, %v1398_v25  ;;  %v1769_v25 = vld [vmem:[%s2887_s26 + $0x139] sm:$0xff] }
 0x28c   : > { %1698 = vst.msk [vmem:[#allocation2 + $0x18] sm:$0xff] %vm1694_vm6, %v1581_v28 }
 0x28f   : > { %2096 = vrot.lane.b32.xlu1 %v1996_v26, %s2826_s7  ;;  %1875 = vrot.lane.b32.xlu0 %v1765_v27, %s2825_s6  ;;  %v2261_v26 = vld [vmem:[%s4132_s1 + $0x20] sm:$0xf] }
 0x290   : > { %2116 = vrot.lane.b32.xlu2 %v2006_v29, %s2826_s7  ;;  %2713 = vmatpush.msk.msra.mxu2 %vm2387_vm7, %v2261_v26  ;;  %v2260_v29 = vld [vmem:[%s4132_s1 + $0x18] sm:$0xff] }
 0x291   : > { %v1406_v30 = vpop.permute.xlu1 %1405  ;;  %v1404_v31 = vpop.permute.xlu0 %1403  ;;  %2714 = vmatpush.msk.msra.mxu3 %vm2387_vm7, %v2261_v26  ;;  %2669 = vmatpush.msk.msra.mxu0 %vm2387_vm7, %v2261_v26 }
 0x292   : > { %1490 = vst.msk [vmem:[#allocation2 + $0x120] sm:$0xff] %vm1453_vm5, %v1406_v30  ;;  %v1587_v34 = vpop.permute.xlu2 %1586  ;;  %2712 = vmatpush.msk.msra.mxu1 %vm2387_vm7, %v2261_v26  ;;  %v2259_v30 = vld [vmem:[%s4132_s1 + $0x10] sm:$0xff]  ;;  %2716 = vmatpush.msra.mxu2 %v2260_v29  ;;  %v2003_v26 = vld [vmem:[%s2887_s26 + $0x102] sm:$0xff] }
 0x293   : > { %1489 = vst.msk [vmem:[#allocation2 + $0x118] sm:$0xff] %vm1453_vm5, %v1404_v31  ;;  %v2010_v31 = vld [vmem:[%s2887_s26 + $0x13a] sm:$0xff]  ;;  %2717 = vmatpush.msra.mxu3 %v2260_v29  ;;  %2403 = vmatpush.msra.mxu0 %v2260_v29 }
 0x294   : > { %1701 = vst.msk [vmem:[#allocation2 + $0x30] sm:$0xff] %vm1694_vm6, %v1587_v34  ;;  %v2258_v34 = vld [vmem:[%s4132_s1 + $0x8] sm:$0xff]  ;;  %2715 = vmatpush.msra.mxu1 %v2260_v29  ;;  %2719 = vmatpush.msra.mxu2 %v2259_v30 }
 0x295   : > { %2720 = vmatpush.msra.mxu3 %v2259_v30  ;;  %2404 = vmatpush.msra.mxu0 %v2259_v30 }
 0x296   : > { %2722 = vmatpush.msra.mxu2 %v2258_v34  ;;  %2718 = vmatpush.msra.mxu1 %v2259_v30 }
 0x297   : > { %1835 = vrot.lane.b32.xlu1 %v1745_v32, %s2825_s6  ;;  %1815 = vrot.lane.b32.xlu0 %v1735_v33, %s2825_s6  ;;  %v2000_v32 = vld [vmem:[%s2887_s26 + $0xea] sm:$0xff] }
 0x298   : > { %2056 = vrot.lane.b32.xlu2 %v1976_v35, %s2826_s7  ;;  %v1739_v35 = vld [vmem:[%s2887_s26 + $0x49] sm:$0xff]  ;;  %2723 = vmatpush.msra.mxu3 %v2258_v34 }
 0x299   : > { %v1412_v36 = vpop.permute.xlu1 %1411  ;;  %v1410_v37 = vpop.permute.xlu0 %1409  ;;  %2405 = vmatpush.msra.mxu0 %v2258_v34  ;;  %2721 = vmatpush.msra.mxu1 %v2258_v34  ;;  %v1752_v34 = vld [vmem:[%s2887_s26 + $0xb1] sm:$0xff] }
 0x29a   : > { %1493 = vst.msk [vmem:[#allocation2 + $0x138] sm:$0xff] %vm1453_vm5, %v1412_v36  ;;  %v1593_v40 = vpop.permute.xlu2 %1592  ;;  %v2257_v36 = vld [vmem:[%s4132_s1] sm:$0xff] }
 0x29b   : > { %1492 = vst.msk [vmem:[#allocation2 + $0x130] sm:$0xff] %vm1453_vm5, %v1410_v37  ;;  %2725 = vmatpush.msra.mxu2 %v2257_v36  ;;  %2726 = vmatpush.msra.mxu3 %v2257_v36 }
 0x29c   : > { %1704 = vst.msk [vmem:[#allocation2 + $0x48] sm:$0xff] %vm1694_vm6, %v1593_v40  ;;  %v1749_v40 = vld [vmem:[%s2887_s26 + $0x99] sm:$0xff]  ;;  %2406 = vmatpush.msra.mxu0 %v2257_v36  ;;  %2724 = vmatpush.msra.mxu1 %v2257_v36 }
 0x29f   : > { %1857 = vrot.lane.b32.xlu1 %v1756_v38, %s2825_s6  ;;  %2076 = vrot.lane.b32.xlu0 %v1986_v39, %s2826_s7  ;;  %v1980_v39 = vld [vmem:[%s2887_s26 + $0x4a] sm:$0xff] }
 0x2a0   : > { %1877 = vrot.lane.b32.xlu2 %v1766_v41, %s2825_s6 }
 0x2a1   : > { %v1579_v42 = vpop.permute.xlu1 %1578  ;;  %v1577_v43 = vpop.permute.xlu0 %1576 }
 0x2a2   : > { %1697 = vst.msk [vmem:[#allocation2 + $0x10] sm:$0xff] %vm1694_vm6, %v1579_v42  ;;  %v1599_v46 = vpop.permute.xlu2 %1598  ;;  %v1990_v42 = vld [vmem:[%s2887_s26 + $0x9a] sm:$0xff] }
 0x2a3   : > { %1696 = vst.msk [vmem:[#allocation2 + $0x8] sm:$0xff] %vm1694_vm6, %v1577_v43 }
 0x2a4   : > { %1707 = vst.msk [vmem:[#allocation2 + $0x60] sm:$0xff] %vm1694_vm6, %v1599_v46  ;;  %v1760_v46 = vld [vmem:[%s2887_s26 + $0xf1] sm:$0xff] }
 0x2a7   : > { %2118 = vrot.lane.b32.xlu1 %v2007_v44, %s2826_s7  ;;  %2098 = vrot.lane.b32.xlu0 %v1997_v45, %s2826_s7  ;;  %v1770_v45 = vld [vmem:[%s2887_s26 + $0x141] sm:$0xff] }
 0x2a8   : > { %1817 = vrot.lane.b32.xlu2 %v1736_v47, %s2825_s6 }
 0x2a9   : > { %v1585_v48 = vpop.permute.xlu1 %1584  ;;  %v1583_v49 = vpop.permute.xlu0 %1582 }
 0x2aa   : > { %1700 = vst.msk [vmem:[#allocation2 + $0x28] sm:$0xff] %vm1694_vm6, %v1585_v48  ;;  %v1605_v52 = vpop.permute.xlu2 %1604  ;;  %v2001_v48 = vld [vmem:[%s2887_s26 + $0xf2] sm:$0xff] }
 0x2ab   : > { %1699 = vst.msk [vmem:[#allocation2 + $0x20] sm:$0xff] %vm1694_vm6, %v1583_v49 }
 0x2ac   : > { %1710 = vst.msk [vmem:[#allocation2 + $0x78] sm:$0xff] %vm1694_vm6, %v1605_v52  ;;  %v2011_v52 = vld [vmem:[%s2887_s26 + $0x142] sm:$0xff] }
 0x2af   : > { %2058 = vrot.lane.b32.xlu1 %v1977_v50, %s2826_s7  ;;  %1837 = vrot.lane.b32.xlu0 %v1746_v51, %s2825_s6  ;;  %v1740_v51 = vld [vmem:[%s2887_s26 + $0x51] sm:$0xff] }
 0x2b0   : > { %2078 = vrot.lane.b32.xlu2 %v1987_v53, %s2826_s7 }
 0x2b1   : > { %v1591_v54 = vpop.permute.xlu1 %1590  ;;  %v1589_v55 = vpop.permute.xlu0 %1588 }
 0x2b2   : > { %1703 = vst.msk [vmem:[#allocation2 + $0x40] sm:$0xff] %vm1694_vm6, %v1591_v54  ;;  %v1611_v58 = vpop.permute.xlu2 %1610  ;;  %v1750_v54 = vld [vmem:[%s2887_s26 + $0xa1] sm:$0xff] }
 0x2b3   : > { %1702 = vst.msk [vmem:[#allocation2 + $0x38] sm:$0xff] %vm1694_vm6, %v1589_v55 }
 0x2b4   : > { %1713 = vst.msk [vmem:[#allocation2 + $0x90] sm:$0xff] %vm1694_vm6, %v1611_v58  ;;  %v1530_v58 = vld [vmem:[%s2887_s26 + $0x148] sm:$0xff] }
 0x2b7   : > { %1879 = vrot.lane.b32.xlu1 %v1767_v56, %s2825_s6  ;;  %1859 = vrot.lane.b32.xlu0 %v1757_v57, %s2825_s6  ;;  %v1981_v57 = vld [vmem:[%s2887_s26 + $0x52] sm:$0xff] }
 0x2b8   : > { %2100 = vrot.lane.b32.xlu2 %v1998_v59, %s2826_s7 }
 0x2b9   : > { %v1597_v60 = vpop.permute.xlu1 %1596  ;;  %v1595_v61 = vpop.permute.xlu0 %1594 }
 0x2ba   : > { %1706 = vst.msk [vmem:[#allocation2 + $0x58] sm:$0xff] %vm1694_vm6, %v1597_v60  ;;  %v1617_v0 = vpop.permute.xlu2 %1616  ;;  %v1991_v60 = vld [vmem:[%s2887_s26 + $0xa2] sm:$0xff] }
 0x2bb   : > { %1705 = vst.msk [vmem:[#allocation2 + $0x50] sm:$0xff] %vm1694_vm6, %v1595_v61 }
 0x2bc   : > { %1716 = vst.msk [vmem:[#allocation2 + $0xa8] sm:$0xff] %vm1694_vm6, %v1617_v0 }
 0x2bf   : > { %1819 = vrot.lane.b32.xlu1 %v1737_v62, %s2825_s6  ;;  %2120 = vrot.lane.b32.xlu0 %v2008_v63, %s2826_s7 }
 0x2c0   : > { %1839 = vrot.lane.b32.xlu2 %v1747_v1, %s2825_s6  ;;  %v1771_v1 = vld [vmem:[%s2887_s26 + $0x149] sm:$0xff] }
 0x2c1   : > { %v1603_v2 = vpop.permute.xlu1 %1602  ;;  %v1601_v3 = vpop.permute.xlu0 %1600 }
 0x2c2   : > { %1709 = vst.msk [vmem:[#allocation2 + $0x70] sm:$0xff] %vm1694_vm6, %v1603_v2  ;;  %v1623_v6 = vpop.permute.xlu2 %1622  ;;  %v1761_v2 = vld [vmem:[%s2887_s26 + $0xf9] sm:$0xff] }
 0x2c3   : > { %1708 = vst.msk [vmem:[#allocation2 + $0x68] sm:$0xff] %vm1694_vm6, %v1601_v3 }
 0x2c4   : > { %1719 = vst.msk [vmem:[#allocation2 + $0xc0] sm:$0xff] %vm1694_vm6, %v1623_v6 }
 0x2c7   : > { %2080 = vrot.lane.b32.xlu1 %v1988_v4, %s2826_s7  ;;  %2060 = vrot.lane.b32.xlu0 %v1978_v5, %s2826_s7  ;;  %v2002_v4 = vld [vmem:[%s2887_s26 + $0xfa] sm:$0xff] }
 0x2c8   : > { %1861 = vrot.lane.b32.xlu2 %v1758_v7, %s2825_s6 }
 0x2c9   : > { %v1609_v8 = vpop.permute.xlu1 %1608  ;;  %v1607_v9 = vpop.permute.xlu0 %1606 }
 0x2ca   : > { %1712 = vst.msk [vmem:[#allocation2 + $0x88] sm:$0xff] %vm1694_vm6, %v1609_v8  ;;  %v1629_v12 = vpop.permute.xlu2 %1628  ;;  %v1741_v8 = vld [vmem:[%s2887_s26 + $0x59] sm:$0xff] }
 0x2cb   : > { %1711 = vst.msk [vmem:[#allocation2 + $0x80] sm:$0xff] %vm1694_vm6, %v1607_v9  ;;  %v2012_v9 = vld [vmem:[%s2887_s26 + $0x14a] sm:$0xff] }
 0x2cc   : > { %1722 = vst.msk [vmem:[#allocation2 + $0xd8] sm:$0xff] %vm1694_vm6, %v1629_v12 }
 0x2cf   : > { %2102 = vrot.lane.b32.xlu1 %v1999_v10, %s2826_s7  ;;  %1881 = vrot.lane.b32.xlu0 %v1768_v11, %s2825_s6  ;;  %v1751_v11 = vld [vmem:[%s2887_s26 + $0xa9] sm:$0xff] }
 0x2d0   : > { %2122 = vrot.lane.b32.xlu2 %v2009_v13, %s2826_s7 }
 0x2d1   : > { %v1615_v14 = vpop.permute.xlu1 %1614  ;;  %v1613_v15 = vpop.permute.xlu0 %1612 }
 0x2d2   : > { %1715 = vst.msk [vmem:[#allocation2 + $0xa0] sm:$0xff] %vm1694_vm6, %v1615_v14  ;;  %v1635_v18 = vpop.permute.xlu2 %1634 }
 0x2d3   : > { %1714 = vst.msk [vmem:[#allocation2 + $0x98] sm:$0xff] %vm1694_vm6, %v1613_v15  ;;  %v1982_v15 = vld [vmem:[%s2887_s26 + $0x5a] sm:$0xff] }
 0x2d4   : > { %1725 = vst.msk [vmem:[#allocation2 + $0xf0] sm:$0xff] %vm1694_vm6, %v1635_v18  ;;  %v1992_v18 = vld [vmem:[%s2887_s26 + $0xaa] sm:$0xff] }
 0x2d7   : > { %1841 = vrot.lane.b32.xlu1 %v1748_v16, %s2825_s6  ;;  %1821 = vrot.lane.b32.xlu0 %v1738_v17, %s2825_s6  ;;  %v1531_v16 = vld [vmem:[%s2887_s26 + $0x150] sm:$0xff] }
 0x2d8   : > { %2062 = vrot.lane.b32.xlu2 %v1979_v19, %s2826_s7 }
 0x2d9   : > { %v1621_v20 = vpop.permute.xlu1 %1620  ;;  %v1619_v21 = vpop.permute.xlu0 %1618 }
 0x2da   : > { %1718 = vst.msk [vmem:[#allocation2 + $0xb8] sm:$0xff] %vm1694_vm6, %v1621_v20  ;;  %v1641_v24 = vpop.permute.xlu2 %1640 }
 0x2db   : > { %1717 = vst.msk [vmem:[#allocation2 + $0xb0] sm:$0xff] %vm1694_vm6, %v1619_v21 }
 0x2dc   : > { %1728 = vst.msk [vmem:[#allocation2 + $0x108] sm:$0xff] %vm1694_vm6, %v1641_v24  ;;  %v1762_v24 = vld [vmem:[%s2887_s26 + $0x101] sm:$0xff] }
 0x2df   : > { %1863 = vrot.lane.b32.xlu1 %v1759_v22, %s2825_s6  ;;  %2082 = vrot.lane.b32.xlu0 %v1989_v23, %s2826_s7  ;;  %v1772_v23 = vld [vmem:[%s2887_s26 + $0x151] sm:$0xff] }
 0x2e0   : > { %1883 = vrot.lane.b32.xlu2 %v1769_v25, %s2825_s6 }
 0x2e1   : > { %v1627_v27 = vpop.permute.xlu1 %1626  ;;  %v1625_v28 = vpop.permute.xlu0 %1624 }
 0x2e2   : > { %1721 = vst.msk [vmem:[#allocation2 + $0xd0] sm:$0xff] %vm1694_vm6, %v1627_v27  ;;  %v1856_v33 = vpop.permute.xlu2 %1855 }
 0x2e3   : > { %1720 = vst.msk [vmem:[#allocation2 + $0xc8] sm:$0xff] %vm1694_vm6, %v1625_v28 }
 0x2e4   : > { %1956 = vst.msk [vmem:[#allocation2 + $0xa0] sm:$0xff] %vm1935_vm8, %v1856_v33 }
 0x2e7   : > { %2124 = vrot.lane.b32.xlu1 %v2010_v31, %s2826_s7  ;;  %2104 = vrot.lane.b32.xlu0 %v2000_v32, %s2826_s7  ;;  %v1742_v31 = vld [vmem:[%s2887_s26 + $0x61] sm:$0xff]  ;;  %v2013_v32 = vld [vmem:[%s2887_s26 + $0x152] sm:$0xff] }
 0x2e8   : > { %1823 = vrot.lane.b32.xlu2 %v1739_v35, %s2825_s6 }
 0x2e9   : > { %v1633_v37 = vpop.permute.xlu1 %1632  ;;  %v1631_v38 = vpop.permute.xlu0 %1630 }
 0x2ea   : > { %1724 = vst.msk [vmem:[#allocation2 + $0xe8] sm:$0xff] %vm1694_vm6, %v1633_v37  ;;  %v2117_v41 = vpop.permute.xlu2 %2116 }
 0x2eb   : > { %1723 = vst.msk [vmem:[#allocation2 + $0xe0] sm:$0xff] %vm1694_vm6, %v1631_v38  ;;  %v1983_v38 = vld [vmem:[%s2887_s26 + $0x62] sm:$0xff] }
 0x2ef   : > { %2064 = vrot.lane.b32.xlu1 %v1980_v39, %s2826_s7  ;;  %1843 = vrot.lane.b32.xlu0 %v1749_v40, %s2825_s6  ;;  %v1532_v39 = vld [vmem:[%s2887_s26 + $0x158] sm:$0xff] }
 0x2f0   : > { %2084 = vrot.lane.b32.xlu2 %v1990_v42, %s2826_s7 }
 0x2f1   : > { %v1639_v43 = vpop.permute.xlu1 %1638  ;;  %v1637_v44 = vpop.permute.xlu0 %1636 }
 0x2f2   : > { %1727 = vst.msk [vmem:[#allocation2 + $0x100] sm:$0xff] %vm1694_vm6, %v1639_v43  ;;  %v2057_v47 = vpop.permute.xlu2 %2056 }
 0x2f3   : > { %1726 = vst.msk [vmem:[#allocation2 + $0xf8] sm:$0xff] %vm1694_vm6, %v1637_v44 }
 0x2f7   : > { %1885 = vrot.lane.b32.xlu1 %v1770_v45, %s2825_s6  ;;  %1865 = vrot.lane.b32.xlu0 %v1760_v46, %s2825_s6  ;;  %v1773_v45 = vld [vmem:[%s2887_s26 + $0x159] sm:$0xff]  ;;  %v1763_v46 = vld [vmem:[%s2887_s26 + $0x109] sm:$0xff] }
 0x2f8   : > { %2106 = vrot.lane.b32.xlu2 %v2001_v48, %s2826_s7  ;;  %v2004_v48 = vld [vmem:[%s2887_s26 + $0x10a] sm:$0xff] }
 0x2f9   : > { %v1645_v49 = vpop.permute.xlu1 %1644  ;;  %v1643_v50 = vpop.permute.xlu0 %1642 }
 0x2fa   : > { %1730 = vst.msk [vmem:[#allocation2 + $0x118] sm:$0xff] %vm1694_vm6, %v1645_v49  ;;  %v1878_v53 = vpop.permute.xlu2 %1877 }
 0x2fb   : > { %1729 = vst.msk [vmem:[#allocation2 + $0x110] sm:$0xff] %vm1694_vm6, %v1643_v50 }
 0x2fc   : > { %1967 = vst.msk [vmem:[#allocation2 + $0xf8] sm:$0xff] %vm1935_vm8, %v1878_v53  ;;  %v1743_v53 = vld [vmem:[%s2887_s26 + $0x69] sm:$0xff] }
 0x2ff   : > { %1825 = vrot.lane.b32.xlu1 %v1740_v51, %s2825_s6  ;;  %2126 = vrot.lane.b32.xlu0 %v2011_v52, %s2826_s7 }
 0x300   : > { %1845 = vrot.lane.b32.xlu2 %v1750_v54, %s2825_s6  ;;  %v2014_v54 = vld [vmem:[%s2887_s26 + $0x15a] sm:$0xff] }
 0x301   : > { %v2097_v55 = vpop.permute.xlu1 %2096  ;;  %v1876_v56 = vpop.permute.xlu0 %1875 }
 0x302   : > { %2197 = vst.msk [vmem:[#allocation2 + $0xa0] sm:$0xff] %vm2176_vm9, %v2097_v55  ;;  %v1818_v59 = vpop.permute.xlu2 %1817 }
 0x303   : > { %1966 = vst.msk [vmem:[#allocation2 + $0xf0] sm:$0xff] %vm1935_vm8, %v1876_v56  ;;  %v1753_v56 = vld [vmem:[%s2887_s26 + $0xb9] sm:$0xff] }
 0x304   : > { %2207 = vst.msk [vmem:[#allocation2 + $0xf0] sm:$0xff] %vm2176_vm9, %v2117_v41  ;;  %v1993_v41 = vld [vmem:[%s2887_s26 + $0xb2] sm:$0xff] }
 0x305   : > { %1937 = vst.msk [vmem:[#allocation2 + $0x8] sm:$0xff] %vm1935_vm8, %v1818_v59 }
 0x307   : > { %2066 = vrot.lane.b32.xlu1 %v1981_v57, %s2826_s7  ;;  %1646 = vrot.lane.b32.xlu0 %v1530_v58, %s2824_s5 }
 0x308   : > { %2086 = vrot.lane.b32.xlu2 %v1991_v60, %s2826_s7 }
 0x309   : > { %v1836_v61 = vpop.permute.xlu1 %1835  ;;  %v1816_v62 = vpop.permute.xlu0 %1815  ;;  %v2237_v63 = vld [vmem:[#allocation2 + $0xa0] sm:$0xff] }
 0x30a   : > { %1946 = vst.msk [vmem:[#allocation2 + $0x50] sm:$0xff] %vm1935_vm8, %v1836_v61  ;;  %2690 = vmatmul.msk.f32.vlgmr.msra.gmra.mxu2 %vm2266_vm10, %v2237_v63  ;;  %v2079_v3 = vpop.permute.xlu2 %2078  ;;  %v1984_v61 = vld [vmem:[%s2887_s26 + $0x6a] sm:$0xff] }
 0x30b   : > { %1936 = vst.msk [vmem:[#allocation2] sm:$0xff] %vm1935_vm8, %v1816_v62  ;;  %v2247_v0 = vld [vmem:[#allocation2 + $0xf0] sm:$0xff]  ;;  %v1533_v62 = vld [vmem:[%s2887_s26 + $0x160] sm:$0xff] }
 0x30c   : > { %2177 = vst.msk [vmem:[#allocation2] sm:$0xff] %vm2176_vm9, %v2057_v47  ;;  %2700 = vmatmul.msk.f32.vlgmr.msra.gmra.mxu3 %vm2266_vm10, %v2247_v0  ;;  %v1994_v0 = vld [vmem:[%s2887_s26 + $0xba] sm:$0xff] }
 0x30f   : > { %1887 = vrot.lane.b32.xlu1 %v1771_v1, %s2825_s6  ;;  %1867 = vrot.lane.b32.xlu0 %v1761_v2, %s2825_s6 }
 0x310   : > { %2108 = vrot.lane.b32.xlu2 %v2002_v4, %s2826_s7  ;;  %v1774_v4 = vld [vmem:[%s2887_s26 + $0x161] sm:$0xff] }
 0x311   : > { %v1858_v5 = vpop.permute.xlu1 %1857  ;;  %v2077_v6 = vpop.permute.xlu0 %2076 }
 0x312   : > { %1957 = vst.msk [vmem:[#allocation2 + $0xa8] sm:$0xff] %vm1935_vm8, %v1858_v5  ;;  %v2101_v10 = vpop.permute.xlu2 %2100  ;;  %v1764_v5 = vld [vmem:[%s2887_s26 + $0x111] sm:$0xff] }
 0x313   : > { %2187 = vst.msk [vmem:[#allocation2 + $0x50] sm:$0xff] %vm2176_vm9, %v2077_v6  ;;  %v2217_v7 = vld [vmem:[#allocation2] sm:$0xff] }
 0x314   : > { %2670 = vmatmul.msk.f32.vlgmr.msra.gmra.mxu0 %vm2266_vm10, %v2217_v7  ;;  %v2005_v7 = vld [vmem:[%s2887_s26 + $0x112] sm:$0xff] }
 0x317   : > { %1827 = vrot.lane.b32.xlu1 %v1741_v8, %s2825_s6  ;;  %2128 = vrot.lane.b32.xlu0 %v2012_v9, %s2826_s7 }
 0x318   : > { %1847 = vrot.lane.b32.xlu2 %v1751_v11, %s2825_s6  ;;  %v1744_v11 = vld [vmem:[%s2887_s26 + $0x71] sm:$0xff] }
 0x319   : > { %v2119_v12 = vpop.permute.xlu1 %2118  ;;  %v2099_v13 = vpop.permute.xlu0 %2098 }
 0x31a   : > { %2208 = vst.msk [vmem:[#allocation2 + $0xf8] sm:$0xff] %vm2176_vm9, %v2119_v12  ;;  %v2227_v14 = vld [vmem:[#allocation2 + $0x50] sm:$0xff]  ;;  %v1840_v17 = vpop.permute.xlu2 %1839  ;;  %v2015_v12 = vld [vmem:[%s2887_s26 + $0x162] sm:$0xff] }
 0x31b   : > { %2198 = vst.msk [vmem:[#allocation2 + $0xa8] sm:$0xff] %vm2176_vm9, %v2099_v13  ;;  %2680 = vmatmul.msk.f32.vlgmr.msra.gmra.mxu1 %vm2266_vm10, %v2227_v14  ;;  %v1754_v14 = vld [vmem:[%s2887_s26 + $0xc1] sm:$0xff] }
 0x31c   : > { %1948 = vst.msk [vmem:[#allocation2 + $0x60] sm:$0xff] %vm1935_vm8, %v1840_v17 }
 0x31f   : > { %2068 = vrot.lane.b32.xlu1 %v1982_v15, %s2826_s7  ;;  %1648 = vrot.lane.b32.xlu0 %v1531_v16, %s2824_s5 }
 0x320   : > { %2088 = vrot.lane.b32.xlu2 %v1992_v18, %s2826_s7 }
 0x321   : > { %v2059_v19 = vpop.permute.xlu1 %2058  ;;  %v1838_v20 = vpop.permute.xlu0 %1837  ;;  %v2248_v21 = vld [vmem:[#allocation2 + $0xf8] sm:$0xff] }
 0x322   : > { %2178 = vst.msk [vmem:[#allocation2 + $0x8] sm:$0xff] %vm2176_vm9, %v2059_v19  ;;  %v2238_v22 = vld [vmem:[#allocation2 + $0xa8] sm:$0xff]  ;;  %2701 = vmatmul.msk.f32.gmra.mxu3 %vm2266_vm10, %v2248_v21  ;;  %v1862_v25 = vpop.permute.xlu2 %1861 }
 0x323   : > { %1947 = vst.msk [vmem:[#allocation2 + $0x58] sm:$0xff] %vm1935_vm8, %v1838_v20  ;;  %2691 = vmatmul.msk.f32.gmra.mxu2 %vm2266_vm10, %v2238_v22  ;;  %v1995_v19 = vld [vmem:[%s2887_s26 + $0xc2] sm:$0xff]  ;;  %v1985_v20 = vld [vmem:[%s2887_s26 + $0x72] sm:$0xff]  ;;  %s2729_s26 = smul.u32 80, %s4146_s13 }
 0x324   : > { %2188 = vst.msk [vmem:[#allocation2 + $0x58] sm:$0xff] %vm2176_vm9, %v2079_v3 }
 0x325   : > { %1959 = vst.msk [vmem:[#allocation2 + $0xb8] sm:$0xff] %vm1935_vm8, %v1862_v25  ;;  %s204_s12 = sadd.s32 %s2729_s26, %s4148_s25 }
 0x326   : > { %s2668_s27 = sshll.u32 %s204_s12, 3 }
 0x327   : > { %1889 = vrot.lane.b32.xlu1 %v1772_v23, %s2825_s6  ;;  %1869 = vrot.lane.b32.xlu0 %v1762_v24, %s2825_s6  ;;  %s3952_s4 = scalar_lea.vmem %s4134_s3, %s2668_s27 }
 0x328   : > { %2110 = vrot.lane.b32.xlu2 %v2003_v26, %s2826_s7 }
 0x329   : > { %v1880_v27 = vpop.permute.xlu1 %1879  ;;  %v1860_v28 = vpop.permute.xlu0 %1859  ;;  %v2218_v29 = vld [vmem:[#allocation2 + $0x8] sm:$0xff] }
 0x32a   : > { %1968 = vst.msk [vmem:[#allocation2 + $0x100] sm:$0xff] %vm1935_vm8, %v1880_v27  ;;  %2671 = vmatmul.msk.f32.gmra.mxu0 %vm2266_vm10, %v2218_v29  ;;  %v2123_v33 = vpop.permute.xlu2 %2122 }
 0x32b   : > { %1958 = vst.msk [vmem:[#allocation2 + $0xb0] sm:$0xff] %vm1935_vm8, %v1860_v28  ;;  %v2228_v30 = vld [vmem:[#allocation2 + $0x58] sm:$0xff] }
 0x32c   : > { %2199 = vst.msk [vmem:[#allocation2 + $0xb0] sm:$0xff] %vm2176_vm9, %v2101_v10  ;;  %2681 = vmatmul.msk.f32.gmra.mxu1 %vm2266_vm10, %v2228_v30 }
 0x32f   : > { %1829 = vrot.lane.b32.xlu1 %v1742_v31, %s2825_s6  ;;  %2130 = vrot.lane.b32.xlu0 %v2013_v32, %s2826_s7 }
 0x330   : > { %1849 = vrot.lane.b32.xlu2 %v1752_v34, %s2825_s6 }
 0x331   : > { %v1820_v35 = vpop.permute.xlu1 %1819  ;;  %v2121_v36 = vpop.permute.xlu0 %2120 }
 0x332   : > { %1938 = vst.msk [vmem:[#allocation2 + $0x10] sm:$0xff] %vm1935_vm8, %v1820_v35  ;;  %v2063_v40 = vpop.permute.xlu2 %2062 }
 0x333   : > { %2209 = vst.msk [vmem:[#allocation2 + $0x100] sm:$0xff] %vm2176_vm9, %v2121_v36  ;;  %v2239_v37 = vld [vmem:[#allocation2 + $0xb0] sm:$0xff] }
 0x334   : > { %2692 = vmatmul.msk.f32.gmra.mxu2 %vm2266_vm10, %v2239_v37 }
 0x337   : > { %2070 = vrot.lane.b32.xlu1 %v1983_v38, %s2826_s7  ;;  %1650 = vrot.lane.b32.xlu0 %v1532_v39, %s2824_s5 }
 0x338   : > { %2090 = vrot.lane.b32.xlu2 %v1993_v41, %s2826_s7 }
 0x339   : > { %v2081_v42 = vpop.permute.xlu1 %2080  ;;  %v2061_v43 = vpop.permute.xlu0 %2060 }
 0x33a   : > { %2189 = vst.msk [vmem:[#allocation2 + $0x60] sm:$0xff] %vm2176_vm9, %v2081_v42  ;;  %v2249_v44 = vld [vmem:[#allocation2 + $0x100] sm:$0xff]  ;;  %v1884_v47 = vpop.permute.xlu2 %1883 }
 0x33b   : > { %2179 = vst.msk [vmem:[#allocation2 + $0x10] sm:$0xff] %vm2176_vm9, %v2061_v43  ;;  %2702 = vmatmul.msk.f32.gmra.mxu3 %vm2266_vm10, %v2249_v44  ;;  %v3945_v43 = vld [vmem:[%s4133_s2] ss:$0 sm:$0xff] }
 0x33c   : > { %1970 = vst.msk [vmem:[#allocation2 + $0x110] sm:$0xff] %vm1935_vm8, %v1884_v47 }
 0x33f   : > { %1891 = vrot.lane.b32.xlu1 %v1773_v45, %s2825_s6  ;;  %1871 = vrot.lane.b32.xlu0 %v1763_v46, %s2825_s6 }
 0x340   : > { %2112 = vrot.lane.b32.xlu2 %v2004_v48, %s2826_s7 }
 0x341   : > { %v2103_v49 = vpop.permute.xlu1 %2102  ;;  %v1882_v50 = vpop.permute.xlu0 %1881  ;;  %v2229_v51 = vld [vmem:[#allocation2 + $0x60] sm:$0xff] }
 0x342   : > { %2200 = vst.msk [vmem:[#allocation2 + $0xb8] sm:$0xff] %vm2176_vm9, %v2103_v49  ;;  %v2219_v52 = vld [vmem:[#allocation2 + $0x10] sm:$0xff]  ;;  %2682 = vmatmul.msk.f32.gmra.mxu1 %vm2266_vm10, %v2229_v51  ;;  %v1824_v55 = vpop.permute.xlu2 %1823 }
 0x343   : > { %1969 = vst.msk [vmem:[#allocation2 + $0x108] sm:$0xff] %vm1935_vm8, %v1882_v50  ;;  %2672 = vmatmul.msk.f32.gmra.mxu0 %vm2266_vm10, %v2219_v52 }
 0x344   : > { %2210 = vst.msk [vmem:[#allocation2 + $0x108] sm:$0xff] %vm2176_vm9, %v2123_v33 }
 0x345   : > { %1940 = vst.msk [vmem:[#allocation2 + $0x20] sm:$0xff] %vm1935_vm8, %v1824_v55 }
 0x347   : > { %1831 = vrot.lane.b32.xlu1 %v1743_v53, %s2825_s6  ;;  %2132 = vrot.lane.b32.xlu0 %v2014_v54, %s2826_s7 }
 0x348   : > { %1851 = vrot.lane.b32.xlu2 %v1753_v56, %s2825_s6 }
 0x349   : > { %v1842_v57 = vpop.permute.xlu1 %1841  ;;  %v1822_v58 = vpop.permute.xlu0 %1821  ;;  %v2240_v59 = vld [vmem:[#allocation2 + $0xb8] sm:$0xff] }
 0x34a   : > { %1949 = vst.msk [vmem:[#allocation2 + $0x68] sm:$0xff] %vm1935_vm8, %v1842_v57  ;;  %2693 = vmatmul.msk.f32.gmra.mxu2 %vm2266_vm10, %v2240_v59  ;;  %v2085_v63 = vpop.permute.xlu2 %2084 }
 0x34b   : > { %1939 = vst.msk [vmem:[#allocation2 + $0x18] sm:$0xff] %vm1935_vm8, %v1822_v58  ;;  %v2250_v60 = vld [vmem:[#allocation2 + $0x108] sm:$0xff] }
 0x34c   : > { %2180 = vst.msk [vmem:[#allocation2 + $0x18] sm:$0xff] %vm2176_vm9, %v2063_v40  ;;  %2703 = vmatmul.msk.f32.gmra.mxu3 %vm2266_vm10, %v2250_v60 }
 0x34f   : > { %2072 = vrot.lane.b32.xlu1 %v1984_v61, %s2826_s7  ;;  %1652 = vrot.lane.b32.xlu0 %v1533_v62, %s2824_s5 }
 0x350   : > { %2092 = vrot.lane.b32.xlu2 %v1994_v0, %s2826_s7 }
 0x351   : > { %v1864_v1 = vpop.permute.xlu1 %1863  ;;  %v2083_v2 = vpop.permute.xlu0 %2082 }
 0x352   : > { %1960 = vst.msk [vmem:[#allocation2 + $0xc0] sm:$0xff] %vm1935_vm8, %v1864_v1  ;;  %v2107_v6 = vpop.permute.xlu2 %2106 }
 0x353   : > { %2190 = vst.msk [vmem:[#allocation2 + $0x68] sm:$0xff] %vm2176_vm9, %v2083_v2  ;;  %v2220_v3 = vld [vmem:[#allocation2 + $0x18] sm:$0xff] }
 0x354   : > { %2673 = vmatmul.msk.f32.gmra.mxu0 %vm2266_vm10, %v2220_v3 }
 0x357   : > { %1893 = vrot.lane.b32.xlu1 %v1774_v4, %s2825_s6  ;;  %1873 = vrot.lane.b32.xlu0 %v1764_v5, %s2825_s6 }
 0x358   : > { %2114 = vrot.lane.b32.xlu2 %v2005_v7, %s2826_s7 }
 0x359   : > { %v2125_v8 = vpop.permute.xlu1 %2124  ;;  %v2105_v9 = vpop.permute.xlu0 %2104 }
 0x35a   : > { %2211 = vst.msk [vmem:[#allocation2 + $0x110] sm:$0xff] %vm2176_vm9, %v2125_v8  ;;  %v2230_v10 = vld [vmem:[#allocation2 + $0x68] sm:$0xff]  ;;  %v1846_v13 = vpop.permute.xlu2 %1845 }
 0x35b   : > { %2201 = vst.msk [vmem:[#allocation2 + $0xc0] sm:$0xff] %vm2176_vm9, %v2105_v9  ;;  %2683 = vmatmul.msk.f32.gmra.mxu1 %vm2266_vm10, %v2230_v10 }
 0x35c   : > { %1951 = vst.msk [vmem:[#allocation2 + $0x78] sm:$0xff] %vm1935_vm8, %v1846_v13 }
 0x35f   : > { %1833 = vrot.lane.b32.xlu1 %v1744_v11, %s2825_s6  ;;  %2134 = vrot.lane.b32.xlu0 %v2015_v12, %s2826_s7 }
 0x360   : > { %1853 = vrot.lane.b32.xlu2 %v1754_v14, %s2825_s6 }
 0x361   : > { %v2065_v15 = vpop.permute.xlu1 %2064  ;;  %v1844_v16 = vpop.permute.xlu0 %1843  ;;  %v2251_v17 = vld [vmem:[#allocation2 + $0x110] sm:$0xff] }
 0x362   : > { %2181 = vst.msk [vmem:[#allocation2 + $0x20] sm:$0xff] %vm2176_vm9, %v2065_v15  ;;  %v2241_v18 = vld [vmem:[#allocation2 + $0xc0] sm:$0xff]  ;;  %2704 = vmatmul.msk.f32.gmra.mxu3 %vm2266_vm10, %v2251_v17  ;;  %v2087_v21 = vpop.permute.xlu2 %2086 }
 0x363   : > { %1950 = vst.msk [vmem:[#allocation2 + $0x70] sm:$0xff] %vm1935_vm8, %v1844_v16  ;;  %2694 = vmatmul.msk.f32.gmra.mxu2 %vm2266_vm10, %v2241_v18 }
 0x364   : > { %2191 = vst.msk [vmem:[#allocation2 + $0x70] sm:$0xff] %vm2176_vm9, %v2085_v63 }
 0x365   : > { %2192 = vst.msk [vmem:[#allocation2 + $0x78] sm:$0xff] %vm2176_vm9, %v2087_v21 }
 0x367   : > { %2094 = vrot.lane.b32.xlu1 %v1995_v19, %s2826_s7  ;;  %2074 = vrot.lane.b32.xlu0 %v1985_v20, %s2826_s7 }
 0x369   : > { %v1886_v22 = vpop.permute.xlu1 %1885  ;;  %v1866_v23 = vpop.permute.xlu0 %1865  ;;  %v2221_v24 = vld [vmem:[#allocation2 + $0x20] sm:$0xff] }
 0x36a   : > { %1971 = vst.msk [vmem:[#allocation2 + $0x118] sm:$0xff] %vm1935_vm8, %v1886_v22  ;;  %2674 = vmatmul.msk.f32.gmra.mxu0 %vm2266_vm10, %v2221_v24  ;;  %v2109_v26 = vpop.permute.xlu2 %2108 }
 0x36b   : > { %1961 = vst.msk [vmem:[#allocation2 + $0xc8] sm:$0xff] %vm1935_vm8, %v1866_v23  ;;  %v2231_v25 = vld [vmem:[#allocation2 + $0x70] sm:$0xff] }
 0x36c   : > { %2202 = vst.msk [vmem:[#allocation2 + $0xc8] sm:$0xff] %vm2176_vm9, %v2107_v6  ;;  %2684 = vmatmul.msk.f32.gmra.mxu1 %vm2266_vm10, %v2231_v25  ;;  %v2232_v29 = vld [vmem:[#allocation2 + $0x78] sm:$0xff] }
 0x371   : > { %v1826_v27 = vpop.permute.xlu1 %1825  ;;  %v2127_v28 = vpop.permute.xlu0 %2126 }
 0x372   : > { %1941 = vst.msk [vmem:[#allocation2 + $0x28] sm:$0xff] %vm1935_vm8, %v1826_v27  ;;  %v1848_v31 = vpop.permute.xlu2 %1847 }
 0x373   : > { %2212 = vst.msk [vmem:[#allocation2 + $0x118] sm:$0xff] %vm2176_vm9, %v2127_v28  ;;  %v2242_v30 = vld [vmem:[#allocation2 + $0xc8] sm:$0xff] }
 0x374   : > { %2695 = vmatmul.msk.f32.gmra.mxu2 %vm2266_vm10, %v2242_v30  ;;  %2685 = vmatmul.msk.f32.gmra.mxu1 %vm2266_vm10, %v2232_v29  ;;  %1952 = vst.msk [vmem:[#allocation2 + $0x80] sm:$0xff] %vm1935_vm8, %v1848_v31 }
 0x379   : > { %v2067_v32 = vpop.permute.xlu1 %2066  ;;  %v1647_v33 = vpop.permute.xlu0 %1646 }
 0x37a   : > { %2182 = vst.msk [vmem:[#allocation2 + $0x28] sm:$0xff] %vm2176_vm9, %v2067_v32  ;;  %v2252_v34 = vld [vmem:[#allocation2 + $0x118] sm:$0xff]  ;;  %v2089_v35 = vpop.permute.xlu2 %2088 }
 0x37b   : > { %1731 = vst.msk [vmem:[#allocation2 + $0x120] sm:$0xff] %vm1694_vm6, %v1647_v33  ;;  %2705 = vmatmul.msk.f32.gmra.mxu3 %vm2266_vm10, %v2252_v34 }
 0x37c   : > { %2193 = vst.msk [vmem:[#allocation2 + $0x80] sm:$0xff] %vm2176_vm9, %v2089_v35 }
 0x381   : > { %v1888_v36 = vpop.permute.xlu1 %1887  ;;  %v1868_v37 = vpop.permute.xlu0 %1867  ;;  %v2222_v38 = vld [vmem:[#allocation2 + $0x28] sm:$0xff] }
 0x382   : > { %1972 = vst.msk [vmem:[#allocation2 + $0x120] sm:$0xff] %vm1935_vm8, %v1888_v36  ;;  %2675 = vmatmul.msk.f32.gmra.mxu0 %vm2266_vm10, %v2222_v38  ;;  %v2111_v39 = vpop.permute.xlu2 %2110 }
 0x383   : > { %1962 = vst.msk [vmem:[#allocation2 + $0xd0] sm:$0xff] %vm1935_vm8, %v1868_v37  ;;  %v2233_v40 = vld [vmem:[#allocation2 + $0x80] sm:$0xff] }
 0x384   : > { %2203 = vst.msk [vmem:[#allocation2 + $0xd0] sm:$0xff] %vm2176_vm9, %v2109_v26  ;;  %2686 = vmatmul.msk.f32.gmra.mxu1 %vm2266_vm10, %v2233_v40 }
 0x389   : > { %v1828_v41 = vpop.permute.xlu1 %1827  ;;  %v2129_v42 = vpop.permute.xlu0 %2128 }
 0x38a   : > { %1942 = vst.msk [vmem:[#allocation2 + $0x30] sm:$0xff] %vm1935_vm8, %v1828_v41  ;;  %v1850_v45 = vpop.permute.xlu2 %1849 }
 0x38b   : > { %2213 = vst.msk [vmem:[#allocation2 + $0x120] sm:$0xff] %vm2176_vm9, %v2129_v42  ;;  %v2243_v44 = vld [vmem:[#allocation2 + $0xd0] sm:$0xff] }
 0x38c   : > { %2696 = vmatmul.msk.f32.gmra.mxu2 %vm2266_vm10, %v2243_v44  ;;  %1953 = vst.msk [vmem:[#allocation2 + $0x88] sm:$0xff] %vm1935_vm8, %v1850_v45 }
 0x38d   : > { %v2468_v46 = vpop.f32.mrf.mxu2 }
 0x38e   : > { %v2469_v47 = vadd.f32 %v3945_v43, %v2468_v46 }
 0x38f   : > { %v2498_v48 = vpop.f32.mrf.mxu3 }
 0x390   : > { %2549 = vst.msk [vmem:[%s3952_s4 + $0xa0] sm:$0xff] %vm2528_vm11, %v2469_v47  ;;  %v2499_v49 = vadd.f32 %v3945_v43, %v2498_v48 }
 0x391   : > { %v2069_v50 = vpop.permute.xlu1 %2068  ;;  %v1649_v51 = vpop.permute.xlu0 %1648 }
 0x392   : > { %2183 = vst.msk [vmem:[#allocation2 + $0x30] sm:$0xff] %vm2176_vm9, %v2069_v50  ;;  %v2253_v52 = vld [vmem:[#allocation2 + $0x120] sm:$0xff]  ;;  %v2408_v53 = vpop.f32.mrf.mxu0  ;;  %v2091_v55 = vpop.permute.xlu2 %2090 }
 0x393   : > { %1732 = vst.msk [vmem:[#allocation2 + $0x128] sm:$0xff] %vm1694_vm6, %v1649_v51  ;;  %2706 = vmatmul.msk.f32.gmra.mxu3 %vm2266_vm10, %v2253_v52  ;;  %v2409_v54 = vadd.f32 %v3945_v43, %v2408_v53 }
 0x394   : > { %2559 = vst.msk [vmem:[%s3952_s4 + $0xf0] sm:$0xff] %vm2528_vm11, %v2499_v49 }
 0x395   : > { %2529 = vst.msk [vmem:[%s3952_s4] sm:$0xff] %vm2528_vm11, %v2409_v54 }
 0x396   : > { %2194 = vst.msk [vmem:[#allocation2 + $0x88] sm:$0xff] %vm2176_vm9, %v2091_v55 }
 0x398   : > { %v2438_v56 = vpop.f32.mrf.mxu1 }
 0x399   : > { %v2439_v57 = vadd.f32 %v3945_v43, %v2438_v56  ;;  %v1890_v58 = vpop.permute.xlu1 %1889  ;;  %v1870_v59 = vpop.permute.xlu0 %1869  ;;  %v2223_v60 = vld [vmem:[#allocation2 + $0x30] sm:$0xff] }
 0x39a   : > { %1973 = vst.msk [vmem:[#allocation2 + $0x128] sm:$0xff] %vm1935_vm8, %v1890_v58  ;;  %2676 = vmatmul.msk.f32.gmra.mxu0 %vm2266_vm10, %v2223_v60  ;;  %v2113_v61 = vpop.permute.xlu2 %2112 }
 0x39b   : > { %2539 = vst.msk [vmem:[%s3952_s4 + $0x50] sm:$0xff] %vm2528_vm11, %v2439_v57 }
 0x39c   : > { %1963 = vst.msk [vmem:[#allocation2 + $0xd8] sm:$0xff] %vm1935_vm8, %v1870_v59 }
 0x39d   : > { %2204 = vst.msk [vmem:[#allocation2 + $0xd8] sm:$0xff] %vm2176_vm9, %v2111_v39  ;;  %v2234_v62 = vld [vmem:[#allocation2 + $0x88] sm:$0xff] }
 0x39e   : > { %2687 = vmatmul.msk.f32.gmra.mxu1 %vm2266_vm10, %v2234_v62 }
 0x3a1   : > { %v1830_v63 = vpop.permute.xlu1 %1829  ;;  %v2131_v0 = vpop.permute.xlu0 %2130 }
 0x3a2   : > { %1943 = vst.msk [vmem:[#allocation2 + $0x38] sm:$0xff] %vm1935_vm8, %v1830_v63  ;;  %v1852_v2 = vpop.permute.xlu2 %1851 }
 0x3a3   : > { %2214 = vst.msk [vmem:[#allocation2 + $0x128] sm:$0xff] %vm2176_vm9, %v2131_v0 }
 0x3a4   : > { %v2244_v1 = vld [vmem:[#allocation2 + $0xd8] sm:$0xff]  ;;  %1954 = vst.msk [vmem:[#allocation2 + $0x90] sm:$0xff] %vm1935_vm8, %v1852_v2 }
 0x3a5   : > { %v2501_v3 = vpop.f32.mrf.mxu3  ;;  %2697 = vmatmul.msk.f32.gmra.mxu2 %vm2266_vm10, %v2244_v1 }
 0x3a6   : > { %v2471_v4 = vpop.f32.mrf.mxu2  ;;  %v2502_v5 = vadd.f32 %v3945_v43, %v2501_v3 }
 0x3a7   : > { %v2472_v6 = vadd.f32 %v3945_v43, %v2471_v4  ;;  %v2411_v7 = vpop.f32.mrf.mxu0 }
 0x3a8   : > { %2560 = vst.msk [vmem:[%s3952_s4 + $0xf8] sm:$0xff] %vm2528_vm11, %v2502_v5  ;;  %v2412_v8 = vadd.f32 %v3945_v43, %v2411_v7 }
 0x3a9   : > { %2550 = vst.msk [vmem:[%s3952_s4 + $0xa8] sm:$0xff] %vm2528_vm11, %v2472_v6  ;;  %v2071_v9 = vpop.permute.xlu1 %2070  ;;  %v1651_v10 = vpop.permute.xlu0 %1650 }
 0x3aa   : > { %2530 = vst.msk [vmem:[%s3952_s4 + $0x8] sm:$0xff] %vm2528_vm11, %v2412_v8  ;;  %v2254_v11 = vld [vmem:[#allocation2 + $0x128] sm:$0xff]  ;;  %v2441_v12 = vpop.f32.mrf.mxu1  ;;  %v2093_v14 = vpop.permute.xlu2 %2092 }
 0x3ab   : > { %2184 = vst.msk [vmem:[#allocation2 + $0x38] sm:$0xff] %vm2176_vm9, %v2071_v9  ;;  %2707 = vmatmul.msk.f32.gmra.mxu3 %vm2266_vm10, %v2254_v11  ;;  %v2442_v13 = vadd.f32 %v3945_v43, %v2441_v12 }
 0x3ac   : > { %1733 = vst.msk [vmem:[#allocation2 + $0x130] sm:$0xff] %vm1694_vm6, %v1651_v10 }
 0x3ad   : > { %2540 = vst.msk [vmem:[%s3952_s4 + $0x58] sm:$0xff] %vm2528_vm11, %v2442_v13 }
 0x3ae   : > { %2195 = vst.msk [vmem:[#allocation2 + $0x90] sm:$0xff] %vm2176_vm9, %v2093_v14 }
 0x3b1   : > { %v1892_v15 = vpop.permute.xlu1 %1891  ;;  %v1872_v16 = vpop.permute.xlu0 %1871 }
 0x3b2   : > { %1974 = vst.msk [vmem:[#allocation2 + $0x130] sm:$0xff] %vm1935_vm8, %v1892_v15  ;;  %v2224_v17 = vld [vmem:[#allocation2 + $0x38] sm:$0xff]  ;;  %v2115_v18 = vpop.permute.xlu2 %2114 }
 0x3b3   : > { %1964 = vst.msk [vmem:[#allocation2 + $0xe0] sm:$0xff] %vm1935_vm8, %v1872_v16  ;;  %2677 = vmatmul.msk.f32.gmra.mxu0 %vm2266_vm10, %v2224_v17 }
 0x3b4   : > { %2205 = vst.msk [vmem:[#allocation2 + $0xe0] sm:$0xff] %vm2176_vm9, %v2113_v61 }
 0x3b5   : > { %v2235_v19 = vld [vmem:[#allocation2 + $0x90] sm:$0xff] }
 0x3b6   : > { %2688 = vmatmul.msk.f32.gmra.mxu1 %vm2266_vm10, %v2235_v19 }
 0x3b7   : > { %v2474_v20 = vpop.f32.mrf.mxu2 }
 0x3b8   : > { %v2475_v21 = vadd.f32 %v3945_v43, %v2474_v20 }
 0x3b9   : > { %v1832_v22 = vpop.permute.xlu1 %1831  ;;  %v2133_v23 = vpop.permute.xlu0 %2132 }
 0x3ba   : > { %1944 = vst.msk [vmem:[#allocation2 + $0x40] sm:$0xff] %vm1935_vm8, %v1832_v22  ;;  %v1854_v25 = vpop.permute.xlu2 %1853 }
 0x3bb   : > { %2215 = vst.msk [vmem:[#allocation2 + $0x130] sm:$0xff] %vm2176_vm9, %v2133_v23  ;;  %v2245_v24 = vld [vmem:[#allocation2 + $0xe0] sm:$0xff] }
 0x3bc   : > { %2551 = vst.msk [vmem:[%s3952_s4 + $0xb0] sm:$0xff] %vm2528_vm11, %v2475_v21  ;;  %2698 = vmatmul.msk.f32.gmra.mxu2 %vm2266_vm10, %v2245_v24 }
 0x3bd   : > { %1955 = vst.msk [vmem:[#allocation2 + $0x98] sm:$0xff] %vm1935_vm8, %v1854_v25 }
 0x3be   : > { %v2504_v26 = vpop.f32.mrf.mxu3 }
 0x3bf   : > { %v2505_v27 = vadd.f32 %v3945_v43, %v2504_v26  ;;  %v2444_v28 = vpop.f32.mrf.mxu1 }
 0x3c0   : > { %v2414_v29 = vpop.f32.mrf.mxu0  ;;  %v2445_v30 = vadd.f32 %v3945_v43, %v2444_v28 }
 0x3c1   : > { %2561 = vst.msk [vmem:[%s3952_s4 + $0x100] sm:$0xff] %vm2528_vm11, %v2505_v27  ;;  %v2415_v31 = vadd.f32 %v3945_v43, %v2414_v29  ;;  %v2073_v32 = vpop.permute.xlu1 %2072  ;;  %v1653_v33 = vpop.permute.xlu0 %1652 }
 0x3c2   : > { %2541 = vst.msk [vmem:[%s3952_s4 + $0x60] sm:$0xff] %vm2528_vm11, %v2445_v30  ;;  %v2255_v34 = vld [vmem:[#allocation2 + $0x130] sm:$0xff] }
 0x3c3   : > { %2531 = vst.msk [vmem:[%s3952_s4 + $0x10] sm:$0xff] %vm2528_vm11, %v2415_v31  ;;  %2708 = vmatmul.msk.f32.gmra.mxu3 %vm2266_vm10, %v2255_v34 }
 0x3c4   : > { %2185 = vst.msk [vmem:[#allocation2 + $0x40] sm:$0xff] %vm2176_vm9, %v2073_v32 }
 0x3c5   : > { %1734 = vst.msk [vmem:[#allocation2 + $0x138] sm:$0xff] %vm1694_vm6, %v1653_v33 }
 0x3c9   : > { %v1894_v35 = vpop.permute.xlu1 %1893  ;;  %v1874_v36 = vpop.permute.xlu0 %1873 }
 0x3ca   : > { %1975 = vst.msk [vmem:[#allocation2 + $0x138] sm:$0xff] %vm1935_vm8, %v1894_v35 }
 0x3cb   : > { %1965 = vst.msk [vmem:[#allocation2 + $0xe8] sm:$0xff] %vm1935_vm8, %v1874_v36  ;;  %v2225_v37 = vld [vmem:[#allocation2 + $0x40] sm:$0xff] }
 0x3cc   : > { %2678 = vmatmul.msk.f32.gmra.mxu0 %vm2266_vm10, %v2225_v37  ;;  %2206 = vst.msk [vmem:[#allocation2 + $0xe8] sm:$0xff] %vm2176_vm9, %v2115_v18 }
 0x3cd   : > { %v2477_v38 = vpop.f32.mrf.mxu2 }
 0x3ce   : > { %v2478_v39 = vadd.f32 %v3945_v43, %v2477_v38 }
 0x3cf   : > { %v2507_v40 = vpop.f32.mrf.mxu3 }
 0x3d0   : > { %2552 = vst.msk [vmem:[%s3952_s4 + $0xb8] sm:$0xff] %vm2528_vm11, %v2478_v39  ;;  %v2508_v41 = vadd.f32 %v3945_v43, %v2507_v40 }
 0x3d1   : > { %v1834_v42 = vpop.permute.xlu1 %1833  ;;  %v2135_v44 = vpop.permute.xlu0 %2134 }
 0x3d2   : > { %1945 = vst.msk [vmem:[#allocation2 + $0x48] sm:$0xff] %vm1935_vm8, %v1834_v42  ;;  %v2417_v45 = vpop.f32.mrf.mxu0 }
 0x3d3   : > { %2216 = vst.msk [vmem:[#allocation2 + $0x138] sm:$0xff] %vm2176_vm9, %v2135_v44  ;;  %v2418_v46 = vadd.f32 %v3945_v43, %v2417_v45  ;;  %v2246_v47 = vld [vmem:[#allocation2 + $0xe8] sm:$0xff] }
 0x3d4   : > { %2562 = vst.msk [vmem:[%s3952_s4 + $0x108] sm:$0xff] %vm2528_vm11, %v2508_v41  ;;  %2699 = vmatmul.msk.f32.gmra.mxu2 %vm2266_vm10, %v2246_v47 }
 0x3d5   : > { %2532 = vst.msk [vmem:[%s3952_s4 + $0x18] sm:$0xff] %vm2528_vm11, %v2418_v46 }
 0x3d8   : > { %v2447_v48 = vpop.f32.mrf.mxu1 }
 0x3d9   : > { %v2448_v49 = vadd.f32 %v3945_v43, %v2447_v48  ;;  %v2095_v50 = vpop.permute.xlu1 %2094  ;;  %v2075_v51 = vpop.permute.xlu0 %2074 }
 0x3da   : > { %2196 = vst.msk [vmem:[#allocation2 + $0x98] sm:$0xff] %vm2176_vm9, %v2095_v50  ;;  %v2256_v52 = vld [vmem:[#allocation2 + $0x138] sm:$0xff] }
 0x3db   : > { %2542 = vst.msk [vmem:[%s3952_s4 + $0x68] sm:$0xff] %vm2528_vm11, %v2448_v49  ;;  %2709 = vmatmul.msk.f32.gmra.mxu3 %vm2266_vm10, %v2256_v52 }
 0x3dc   : > { %2186 = vst.msk [vmem:[#allocation2 + $0x48] sm:$0xff] %vm2176_vm9, %v2075_v51 }
 0x3e1   : > { %v2236_v53 = vld [vmem:[#allocation2 + $0x98] sm:$0xff] }
 0x3e2   : > { %2689 = vmatmul.msk.f32.gmra.mxu1 %vm2266_vm10, %v2236_v53 }
 0x3e3   : > { %v2226_v54 = vld [vmem:[#allocation2 + $0x48] sm:$0xff] }
 0x3e4   : > { %2679 = vmatmul.msk.f32.gmra.mxu0 %vm2266_vm10, %v2226_v54 }
 0x3e5   : > { %v2510_v55 = vpop.f32.mrf.mxu3 }
 0x3e6   : > { %v2480_v56 = vpop.f32.mrf.mxu2  ;;  %v2511_v57 = vadd.f32 %v3945_v43, %v2510_v55 }
 0x3e7   : > { %v2481_v58 = vadd.f32 %v3945_v43, %v2480_v56  ;;  %v2420_v59 = vpop.f32.mrf.mxu0 }
 0x3e8   : > { %2563 = vst.msk [vmem:[%s3952_s4 + $0x110] sm:$0xff] %vm2528_vm11, %v2511_v57  ;;  %v2421_v60 = vadd.f32 %v3945_v43, %v2420_v59 }
 0x3e9   : > { %2553 = vst.msk [vmem:[%s3952_s4 + $0xc0] sm:$0xff] %vm2528_vm11, %v2481_v58  ;;  %v2450_v61 = vpop.f32.mrf.mxu1 }
 0x3ea   : > { %2533 = vst.msk [vmem:[%s3952_s4 + $0x20] sm:$0xff] %vm2528_vm11, %v2421_v60  ;;  %v2451_v62 = vadd.f32 %v3945_v43, %v2450_v61 }
 0x3ec   : > { %2543 = vst.msk [vmem:[%s3952_s4 + $0x70] sm:$0xff] %vm2528_vm11, %v2451_v62 }
 0x3f1   : > { %v2453_v63 = vpop.f32.mrf.mxu1 }
 0x3f2   : > { %v2454_v0 = vadd.f32 %v3945_v43, %v2453_v63 }
 0x3f4   : > { %2544 = vst.msk [vmem:[%s3952_s4 + $0x78] sm:$0xff] %vm2528_vm11, %v2454_v0 }
 0x3f7   : > { %v2483_v1 = vpop.f32.mrf.mxu2 }
 0x3f8   : > { %v2484_v2 = vadd.f32 %v3945_v43, %v2483_v1 }
 0x3fa   : > { %2554 = vst.msk [vmem:[%s3952_s4 + $0xc8] sm:$0xff] %vm2528_vm11, %v2484_v2 }
 0x3fe   : > { %v2513_v3 = vpop.f32.mrf.mxu3 }
 0x3ff   : > { %v2514_v4 = vadd.f32 %v3945_v43, %v2513_v3  ;;  %v2423_v5 = vpop.f32.mrf.mxu0 }
 0x400   : > { %v2424_v6 = vadd.f32 %v3945_v43, %v2423_v5 }
 0x401   : > { %2564 = vst.msk [vmem:[%s3952_s4 + $0x118] sm:$0xff] %vm2528_vm11, %v2514_v4  ;;  %v2456_v7 = vpop.f32.mrf.mxu1 }
 0x402   : > { %2534 = vst.msk [vmem:[%s3952_s4 + $0x28] sm:$0xff] %vm2528_vm11, %v2424_v6  ;;  %v2457_v8 = vadd.f32 %v3945_v43, %v2456_v7 }
 0x404   : > { %2545 = vst.msk [vmem:[%s3952_s4 + $0x80] sm:$0xff] %vm2528_vm11, %v2457_v8 }
 0x40f   : > { %v2486_v9 = vpop.f32.mrf.mxu2 }
 0x410   : > { %v2487_v10 = vadd.f32 %v3945_v43, %v2486_v9 }
 0x412   : > { %2555 = vst.msk [vmem:[%s3952_s4 + $0xd0] sm:$0xff] %vm2528_vm11, %v2487_v10 }
 0x416   : > { %v2516_v11 = vpop.f32.mrf.mxu3 }
 0x417   : > { %v2517_v12 = vadd.f32 %v3945_v43, %v2516_v11  ;;  %v2426_v13 = vpop.f32.mrf.mxu0 }
 0x418   : > { %v2427_v14 = vadd.f32 %v3945_v43, %v2426_v13 }
 0x419   : > { %2565 = vst.msk [vmem:[%s3952_s4 + $0x120] sm:$0xff] %vm2528_vm11, %v2517_v12 }
 0x41a   : > { %2535 = vst.msk [vmem:[%s3952_s4 + $0x30] sm:$0xff] %vm2528_vm11, %v2427_v14 }
 0x41b   : > { %v2459_v15 = vpop.f32.mrf.mxu1 }
 0x41c   : > { %v2460_v16 = vadd.f32 %v3945_v43, %v2459_v15 }
 0x41e   : > { %2546 = vst.msk [vmem:[%s3952_s4 + $0x88] sm:$0xff] %vm2528_vm11, %v2460_v16 }
 0x428   : > { %v2489_v17 = vpop.f32.mrf.mxu2 }
 0x429   : > { %v2490_v18 = vadd.f32 %v3945_v43, %v2489_v17 }
 0x42b   : > { %2556 = vst.msk [vmem:[%s3952_s4 + $0xd8] sm:$0xff] %vm2528_vm11, %v2490_v18 }
 0x42e   : > { %v2519_v19 = vpop.f32.mrf.mxu3 }
 0x42f   : > { %v2520_v20 = vadd.f32 %v3945_v43, %v2519_v19 }
 0x430   : > { %v2429_v21 = vpop.f32.mrf.mxu0 }
 0x431   : > { %2566 = vst.msk [vmem:[%s3952_s4 + $0x128] sm:$0xff] %vm2528_vm11, %v2520_v20  ;;  %v2430_v22 = vadd.f32 %v3945_v43, %v2429_v21 }
 0x433   : > { %2536 = vst.msk [vmem:[%s3952_s4 + $0x38] sm:$0xff] %vm2528_vm11, %v2430_v22  ;;  %v2462_v23 = vpop.f32.mrf.mxu1 }
 0x434   : > { %v2463_v24 = vadd.f32 %v3945_v43, %v2462_v23 }
 0x436   : > { %2547 = vst.msk [vmem:[%s3952_s4 + $0x90] sm:$0xff] %vm2528_vm11, %v2463_v24 }
 0x43f   : > { %v2492_v25 = vpop.f32.mrf.mxu2 }
 0x440   : > { %v2493_v26 = vadd.f32 %v3945_v43, %v2492_v25 }
 0x442   : > { %2557 = vst.msk [vmem:[%s3952_s4 + $0xe0] sm:$0xff] %vm2528_vm11, %v2493_v26 }
 0x446   : > { %v2522_v27 = vpop.f32.mrf.mxu3 }
 0x447   : > { %v2523_v28 = vadd.f32 %v3945_v43, %v2522_v27 }
 0x449   : > { %2567 = vst.msk [vmem:[%s3952_s4 + $0x130] sm:$0xff] %vm2528_vm11, %v2523_v28  ;;  %v2432_v29 = vpop.f32.mrf.mxu0 }
 0x44a   : > { %v2433_v30 = vadd.f32 %v3945_v43, %v2432_v29 }
 0x44c   : > { %2537 = vst.msk [vmem:[%s3952_s4 + $0x40] sm:$0xff] %vm2528_vm11, %v2433_v30 }
 0x457   : > { %v2495_v31 = vpop.f32.mrf.mxu2 }
 0x458   : > { %v2496_v32 = vadd.f32 %v3945_v43, %v2495_v31 }
 0x45a   : > { %2558 = vst.msk [vmem:[%s3952_s4 + $0xe8] sm:$0xff] %vm2528_vm11, %v2496_v32 }
 0x45e   : > { %v2525_v33 = vpop.f32.mrf.mxu3 }
 0x45f   : > { %v2526_v34 = vadd.f32 %v3945_v43, %v2525_v33  ;;  %v2465_v35 = vpop.f32.mrf.mxu1 }
 0x460   : > { %v2466_v36 = vadd.f32 %v3945_v43, %v2465_v35 }
 0x461   : > { %2568 = vst.msk [vmem:[%s3952_s4 + $0x138] sm:$0xff] %vm2528_vm11, %v2526_v34  ;;  %v2435_v37 = vpop.f32.mrf.mxu0 }
 0x462   : > { %v2436_v38 = vadd.f32 %v3945_v43, %v2435_v37  ;;  %2548 = vst.msk [vmem:[%s3952_s4 + $0x98] sm:$0xff] %vm2528_vm11, %v2466_v36 }
 0x464   : > { %2538 = vst.msk [vmem:[%s3952_s4 + $0x48] sm:$0xff] %vm2528_vm11, %v2436_v38 }
 0x465 PF: > { %s13_s16 = sadd.s32 1, %s2817_s16   ;;  %s4135_s12 = smov %s2809_s14 }
 0x466   : > { %p10_p8 = scmp.ge.s32.totalorder %s13_s16, 6   ;;  %s4136_s13 = smov %s2813_s15 }
 0x467   : > { %s4137_s14 = smov %s4140_s17  ;;  %s4138_s15 = smov %s4144_s18 }
 0x468   :  { %12 = sbr.rel (!%p10_p8) target bundleno = 3 (0x3), region = 62 }

</bundles_post_ra>
